<compile_context>
chip_gen: v6e
topology: v6e:2x2x1
jax: 0.10.0
libtpu: 0.0.40
codegen_flags: <defaults>
</compile_context>

<pallas_src>
import functools

import numpy as np
import jax
import jax.numpy as jnp
from jax.experimental import pallas as pl
from jax.experimental.pallas import tpu as pltpu

NEG = -1e30  # finite stand-in for -inf so the DP never produces NaN (inf - inf)


def _round_up(x, m):
    return ((x + m - 1) // m) * m


def _ctc_kernel(pred_ref, label_ref, len_ref, out_ref, lpe_ref, *,
                blank, gather_dtype, c_chunk, exp_in_bf16):
    # pred_ref : (BB, T, C)    VMEM block  -- logits (f32 or bf16) for BB batch items
    # label_ref: (BB, Lmax)    VMEM block  -- int32 labels
    # len_ref  : (BB, 1)       VMEM block  -- int32 target lengths
    # out_ref  : (BB, 128)     VMEM block  -- per-item loss broadcast across lanes
    # lpe_ref  : (T, BB, 128)  VMEM scratch -- log-probs of extended labels, time-major
    BB, T, C = pred_ref.shape
    Lmax = label_ref.shape[1]
    S_pad = lpe_ref.shape[2]

    # ---- extended label sequence ext[b, s] = blank, l0, blank, l1, ..., blank -------
    # lane-scatter the labels to odd positions with a tiny f32 matmul (exact for ints).
    lab = label_ref[...].astype(jnp.float32)                       # (BB, Lmax)
    j_iota = jax.lax.broadcasted_iota(jnp.int32, (Lmax, S_pad), 0)
    sj_iota = jax.lax.broadcasted_iota(jnp.int32, (Lmax, S_pad), 1)
    scatter = (sj_iota == 2 * j_iota + 1).astype(jnp.float32)      # (Lmax, S_pad)
    ext_f = jnp.dot(lab, scatter, preferred_element_type=jnp.float32)  # (BB, S_pad)

    s_iota = jax.lax.broadcasted_iota(jnp.int32, (BB, S_pad), 1)
    is_odd = (s_iota % 2) == 1
    ext = jnp.where(is_odd & (s_iota < 2 * Lmax), ext_f.astype(jnp.int32), blank)
    ext_m2 = pltpu.roll(ext, shift=2, axis=1)                      # ext[s-2]; wrap killed below

    # skip transition s-2 -> s allowed iff s odd, s >= 3 and ext[s] != ext[s-2]
    # (targets are assumed not to contain the blank index, as torch.nn.CTCLoss requires)
    allow_skip = is_odd & (s_iota >= 3) & (ext != ext_m2)
    skip_add = jnp.where(allow_skip, 0.0, NEG).astype(jnp.float32)  # hoisted out of loop
    mask1 = jnp.where(s_iota >= 1, 0.0, NEG).astype(jnp.float32)    # hoisted out of loop

    # ---- fused online softmax normalizer + one-hot MXU gather over C chunks ---------
    # No (BB, T, C) shifted-logits tensor and no full-vocabulary one-hot are ever
    # materialized; per-chunk temporaries are bounded by c_chunk.
    run_max = jnp.full((BB, T, 1), NEG, dtype=jnp.float32)
    run_sum = jnp.zeros((BB, T, 1), dtype=jnp.float32)
    gath = jnp.zeros((BB, T, S_pad), dtype=jnp.float32)

    n_chunks = (C + c_chunk - 1) // c_chunk
    for ci in range(n_chunks):
        c0 = ci * c_chunk
        cc = min(c_chunk, C - c0)
        if n_chunks == 1:
            chunk = pred_ref[...]                                   # (BB, T, C)
        else:
            chunk = pred_ref[:, :, pl.ds(c0, cc)]                   # (BB, T, cc)
        chunk_f32 = chunk.astype(jnp.float32)

        # online logsumexp over the class axis (accumulated in f32 on every chip)
        new_max = jnp.maximum(run_max, jnp.max(chunk_f32, axis=-1, keepdims=True))
        shifted = chunk_f32 - new_max
        if exp_in_bf16:
            # bf16 EUP exp: ~2x transcendental throughput on v6e/v7x; keep False on v5e.
            e = jnp.exp(shifted.astype(jnp.bfloat16)).astype(jnp.float32)
        else:
            e = jnp.exp(shifted)
        run_sum = run_sum * jnp.exp(run_max - new_max) + jnp.sum(e, axis=-1, keepdims=True)
        run_max = new_max

        # one-hot gather on the RAW logits (each one-hot column sums to 1 over full C,
        # so the normalizer can be subtracted afterwards in f32).
        c_iota = jax.lax.broadcasted_iota(jnp.int32, (BB, cc, S_pad), 1) + c0
        onehot = (c_iota == ext[:, None, :]).astype(gather_dtype)   # (BB, cc, S_pad)
        gath = gath + jax.lax.dot_general(
            chunk.astype(gather_dtype), onehot,
            dimension_numbers=(((2,), (1,)), ((0,), (0,))),
            preferred_element_type=jnp.float32)                     # (BB, T, S_pad)

    lpe = gath - (run_max + jnp.log(run_sum))                       # (BB, T, S_pad) f32

    # Re-pack to time-major scratch so each DP step reads one dense (BB, 128) tile.
    # One-time static re-layout, outside the serial recursion.
    # TODO(synk): replace with a single pltpu.einshape("bts->tbs", ...) store once the
    # leading-dim transpose lowering is verified on all target generations.
    for t in range(T):
        lpe_ref[t] = lpe[:, t, :].astype(lpe_ref.dtype)

    # ---- CTC forward (alpha) recursion over time; state is BB/8 (8,128) vregs -------
    alpha0 = jnp.where(s_iota < 2, lpe_ref[0].astype(jnp.float32), NEG)

    def step(t, alpha):
        row = lpe_ref[t].astype(jnp.float32)                        # (BB, S_pad)
        a1 = alpha
        a2 = pltpu.roll(alpha, shift=1, axis=1) + mask1             # alpha[s-1]
        a3 = pltpu.roll(alpha, shift=2, axis=1) + skip_add          # alpha[s-2] (gated)
        m = jnp.maximum(jnp.maximum(a1, a2), a3)
        lse = m + jnp.log(jnp.exp(a1 - m) + jnp.exp(a2 - m) + jnp.exp(a3 - m))
        return lse + row

    # Adaptive unroll: full unroll for short OCR-style T (EUP latency hiding across the
    # BB/8 independent chains), partial unroll for long T to avoid vreg spills.
    unroll = True if T <= 96 else 8
    alpha_T = jax.lax.fori_loop(1, T, step, alpha0, unroll=unroll)

    # ---- -log p(label | pred) = -logsumexp(alpha[T-1, 2L], alpha[T-1, 2L-1]) --------
    L = len_ref[...]                                                # (BB, 1) int32
    fin_mask = (s_iota == 2 * L) | (s_iota == 2 * L - 1)
    af = jnp.where(fin_mask, alpha_T, NEG)
    mf = jnp.max(af, axis=1, keepdims=True)
    nll = -(mf + jnp.log(jnp.sum(jnp.exp(af - mf), axis=1, keepdims=True)))  # (BB, 1)
    out_ref[...] = jnp.broadcast_to(nll, out_ref.shape)


def ctc_loss(pred, label, label_length, *, blank_idx=0, reduction="mean",
             batch_block=16, gather_in_bf16=True, exp_in_bf16=False,
             class_chunk=512):
    """pred: (B, T, C) logits; label: (B, Lmax) int32; label_length: (B,) int32.

    batch_block: batch items packed per grid step (multiple of 8).  16 keeps >=2
      independent (8,128) alpha chains in flight (EUP latency hiding); on v7x also keep
      the batch grid length >= 2 so dimension_semantics=('parallel',) can shard across
      both TensorCores.  The wrapper caps it to what B actually needs.
    gather_in_bf16: bf16 logits on HBM/MXU and bf16 lpe scratch; DP stays f32.
    exp_in_bf16: bf16 EUP exp for the normalizer -- enable on v6e/v7x only (v5e has no
      bf16 EUP/VPU).
    class_chunk: C-chunk size of the fused online-logsumexp + gather loop.
    """
    B, T, C = pred.shape
    Lmax = label.shape[1]
    S_pad = 128
    assert 2 * Lmax + 1 <= S_pad, "max label length too large for this tiling"
    assert batch_block % 8 == 0, "batch_block must be a multiple of 8 (sublane packing)"

    BB = min(batch_block, _round_up(B, 8))      # don't pad more batch than needed
    B_pad = _round_up(B, BB)

    in_dtype = jnp.bfloat16 if gather_in_bf16 else jnp.float32
    lpe_dtype = jnp.bfloat16 if gather_in_bf16 else jnp.float32
    gather_dtype = jnp.bfloat16 if gather_in_bf16 else jnp.float32

    orig_len = label_length
    pred_p = pred.astype(in_dtype)              # bf16 cast in the wrapper halves HBM bytes
    label_p = label.astype(jnp.int32)
    len_p = label_length.astype(jnp.int32)
    if B_pad != B:
        padn = B_pad - B
        pred_p = jnp.pad(pred_p, ((0, padn), (0, 0), (0, 0)))
        label_p = jnp.pad(label_p, ((0, padn), (0, 0)), constant_values=1)
        len_p = jnp.pad(len_p, (0, padn), constant_values=1)
    len2d = len_p.reshape(B_pad, 1)

    c_chunk = max(1, min(class_chunk, C))

    kernel = functools.partial(
        _ctc_kernel, blank=blank_idx, gather_dtype=gather_dtype,
        c_chunk=c_chunk, exp_in_bf16=exp_in_bf16)

    pred_bytes = 2 if gather_in_bf16 else 4
    lpe_bytes = 2 if gather_in_bf16 else 4
    # Explicit VMEM budget: double-buffered blocks + scratch + headroom for the bounded
    # per-chunk temporaries (chunk / exp / one-hot / gather accumulator).
    vmem_est = (2 * BB * T * C * pred_bytes
                + 2 * BB * Lmax * 4 + 2 * BB * 4
                + 2 * BB * 128 * 4
                + T * BB * 128 * lpe_bytes
                + BB * T * 128 * 4
                + 6 * BB * T * c_chunk * 4)
    vmem_limit = int(min(max(2 * vmem_est, 32 * 2**20), 100 * 2**20))

    cost = pl.CostEstimate(
        flops=2 * B_pad * T * C * S_pad,
        transcendentals=B_pad * T * C + 4 * B_pad * T * S_pad,
        bytes_accessed=(B_pad * T * C * pred_bytes + B_pad * Lmax * 4
                        + B_pad * 4 + B_pad * 128 * 4),
    )

    out = pl.pallas_call(
        kernel,
        out_shape=jax.ShapeDtypeStruct((B_pad, 128), jnp.float32),
        grid_spec=pltpu.PrefetchScalarGridSpec(
            num_scalar_prefetch=0,
            grid=(B_pad // BB,),
            in_specs=[
                pl.BlockSpec((BB, T, C), lambda b: (b, 0, 0)),   # logits
                pl.BlockSpec((BB, Lmax), lambda b: (b, 0)),      # labels
                pl.BlockSpec((BB, 1), lambda b: (b, 0)),         # target lengths
            ],
            out_specs=pl.BlockSpec((BB, 128), lambda b: (b, 0)),  # lane-dense output
            scratch_shapes=[pltpu.VMEM((T, BB, S_pad), lpe_dtype)],
        ),
        # Batch grid axis is independent -> megacore-shardable on v7x (needs grid >= 2).
        compiler_params=pltpu.CompilerParams(
            dimension_semantics=("parallel",),
            vmem_limit_bytes=vmem_limit),
        cost_estimate=cost,
    )(pred_p, label_p, len2d)

    per_item = out[:B, 0]                      # per-batch -log p(label | pred)
    if reduction == "mean":
        # TODO(synk): torch.nn.CTCLoss zero-length-target / zero_infinity semantics are
        # not replicated; lengths are clamped to >= 1 only to avoid a 0-division.
        tl = jnp.maximum(orig_len.astype(jnp.float32), 1.0)
        return jnp.mean(per_item / tl)
    if reduction == "sum":
        return jnp.sum(per_item)
    return per_item


# ------------------------- pure-numpy reference (for the check) ----------------------
def _ctc_ref(pred, label, label_length, blank):
    pred = np.asarray(pred, np.float64)
    B, T, C = pred.shape
    per = []
    for b in range(B):
        x = pred[b] - pred[b].max(axis=-1, keepdims=True)
        lp = x - np.log(np.exp(x).sum(axis=-1, keepdims=True))
        L = int(label_length[b])
        lab = [int(v) for v in np.asarray(label[b])[:L]]
        ext = [blank]
        for v in lab:
            ext += [v, blank]
        S = len(ext)
        alpha = np.full(S, -np.inf)
        alpha[0] = lp[0, ext[0]]
        if S > 1:
            alpha[1] = lp[0, ext[1]]
        for t in range(1, T):
            new = np.full(S, -np.inf)
            for s in range(S):
                acc = alpha[s]
                if s >= 1:
                    acc = np.logaddexp(acc, alpha[s - 1])
                if s >= 2 and ext[s] != blank and ext[s] != ext[s - 2]:
                    acc = np.logaddexp(acc, alpha[s - 2])
                new[s] = acc + lp[t, ext[s]]
            alpha = new
        tot = np.logaddexp(alpha[S - 1], alpha[S - 2]) if S > 1 else alpha[S - 1]
        per.append(-tot)
    per = np.asarray(per)
    return float(np.mean(per / np.asarray(label_length, np.float64)))


if __name__ == "__main__":
    B, T, C, Lmax = 2, 16, 8, 6
    blank_idx = 0

    key = jax.random.PRNGKey(0)
    k1, k2 = jax.random.split(key)
    pred = jax.random.normal(k1, (B, T, C), dtype=jnp.float32)            # logits
    label = jax.random.randint(k2, (B, Lmax), 1, C, dtype=jnp.int32)      # non-blank classes
    label_length = jnp.array([5, 3], dtype=jnp.int32)

    ref = _ctc_ref(np.asarray(pred), np.asarray(label), np.asarray(label_length), blank_idx)

    # Exact (f32 gather, f32 scratch) path: tight tolerance against the f64 reference.
    loss_f32 = ctc_loss(pred, label, label_length, blank_idx=blank_idx,
                        reduction="mean", gather_in_bf16=False)
    loss_f32 = jax.block_until_ready(loss_f32)
    np.testing.assert_allclose(float(loss_f32), ref, rtol=2e-4, atol=2e-4)

    # Fast path: bf16 logits + bf16 MXU gather + bf16 lpe scratch -> looser tolerance.
    loss_bf16 = ctc_loss(pred, label, label_length, blank_idx=blank_idx,
                         reduction="mean", gather_in_bf16=True)
    loss_bf16 = jax.block_until_ready(loss_bf16)
    np.testing.assert_allclose(float(loss_bf16), ref, rtol=7e-2, atol=7e-2)

    print("KERNEL_OK")
</pallas_src>

<mosaic_0001>
module attributes {stable_mosaic.version = 11 : i64} {
  func.func @_ctc_kernel(%arg0: i32, %arg1: memref<8x16x8xf32, #tpu.memory_space<vmem>>, %arg2: memref<8x6xi32, #tpu.memory_space<vmem>>, %arg3: memref<8x1xi32, #tpu.memory_space<vmem>>, %arg4: memref<8x128xf32, #tpu.memory_space<vmem>>, %arg5: memref<16x8x128xf32, #tpu.memory_space<vmem>>) attributes {dimension_semantics = [#tpu.dimension_semantics<parallel>], iteration_bounds = array<i64: 1>, scalar_prefetch = 0 : i64, scratch_operands = 1 : i64, tpu.core_type = #tpu.core_type<tc>, window_params = [{transform_indices = @transform_0, window_bounds = array<i64: 8, 16, 8>}, {transform_indices = @transform_1, window_bounds = array<i64: 8, 6>}, {transform_indices = @transform_2, window_bounds = array<i64: 8, 1>}, {transform_indices = @transform_3, window_bounds = array<i64: 8, 128>}]} {
    %c0 = arith.constant 0 : index
    %c0_0 = arith.constant 0 : index
    %0 = vector.load %arg2[%c0, %c0_0] : memref<8x6xi32, #tpu.memory_space<vmem>>, vector<8x6xi32>
    %1 = arith.sitofp %0 : vector<8x6xi32> to vector<8x6xf32>
    %2 = tpu.iota {dimensions = array<i32: 0>} : vector<6x128xi32>
    %3 = tpu.iota {dimensions = array<i32: 1>} : vector<6x128xi32>
    %c2_i32 = arith.constant 2 : i32
    %4 = vector.broadcast %c2_i32 : i32 to vector<6x128xi32>
    %5 = arith.muli %4, %2 : vector<6x128xi32>
    %c1_i32 = arith.constant 1 : i32
    %6 = vector.broadcast %c1_i32 : i32 to vector<6x128xi32>
    %7 = arith.addi %5, %6 : vector<6x128xi32>
    %8 = arith.cmpi eq, %3, %7 : vector<6x128xi32>
    %9 = arith.extui %8 : vector<6x128xi1> to vector<6x128xi32>
    %10 = arith.sitofp %9 : vector<6x128xi32> to vector<6x128xf32>
    %cst = arith.constant dense<0.000000e+00> : vector<8x128xf32>
    %11 = tpu.matmul %1, %10, %cst {dimension_numbers = #tpu.dot_dimension_numbers<[1], [0], [0], [1], [0, 0, 1, 1], [], []>} : vector<8x6xf32>, vector<6x128xf32>, vector<8x128xf32> -> vector<8x128xf32>
    %12 = tpu.iota {dimensions = array<i32: 1>} : vector<8x128xi32>
    %c2_i32_1 = arith.constant 2 : i32
    %c0_i32 = arith.constant 0 : i32
    %13 = arith.cmpi eq, %c2_i32_1, %c0_i32 : i32
    %c1_i32_2 = arith.constant 1 : i32
    %14 = arith.select %13, %c1_i32_2, %c2_i32_1 : i32
    %15 = vector.broadcast %14 : i32 to vector<8x128xi32>
    %16 = arith.remsi %12, %15 : vector<8x128xi32>
    %c0_i32_3 = arith.constant 0 : i32
    %17 = vector.broadcast %c0_i32_3 : i32 to vector<8x128xi32>
    %18 = arith.cmpi ne, %16, %17 : vector<8x128xi32>
    %c0_i32_4 = arith.constant 0 : i32
    %19 = vector.broadcast %c0_i32_4 : i32 to vector<8x128xi32>
    %20 = arith.cmpi slt, %16, %19 : vector<8x128xi32>
    %c0_i32_5 = arith.constant 0 : i32
    %21 = arith.cmpi slt, %14, %c0_i32_5 : i32
    %22 = vector.broadcast %21 : i1 to vector<8x128xi1>
    %23 = vector.broadcast %22 : vector<8x128xi1> to vector<8x128xi1>
    %24 = arith.xori %20, %23 : vector<8x128xi1>
    %25 = arith.andi %24, %18 : vector<8x128xi1>
    %26 = vector.broadcast %14 : i32 to vector<8x128xi32>
    %27 = arith.addi %16, %26 : vector<8x128xi32>
    %28 = arith.select %25, %27, %16 : vector<8x128xi1>, vector<8x128xi32>
    %c1_i32_6 = arith.constant 1 : i32
    %29 = vector.broadcast %c1_i32_6 : i32 to vector<8x128xi32>
    %30 = arith.cmpi eq, %28, %29 : vector<8x128xi32>
    %c12_i32 = arith.constant 12 : i32
    %31 = vector.broadcast %c12_i32 : i32 to vector<8x128xi32>
    %32 = arith.cmpi slt, %12, %31 : vector<8x128xi32>
    %33 = arith.andi %30, %32 : vector<8x128xi1>
    %34 = arith.fptosi %11 : vector<8x128xf32> to vector<8x128xi32>
    %c0_i32_7 = arith.constant 0 : i32
    %35 = vector.broadcast %c0_i32_7 : i32 to vector<8x128xi32>
    %36 = arith.select %33, %34, %35 : vector<8x128xi1>, vector<8x128xi32>
    %c2_i32_8 = arith.constant 2 : i32
    %37 = tpu.dynamic_rotate %36 by %c2_i32_8 dim 1 : vector<8x128xi32>, i32 -> vector<8x128xi32>
    %c3_i32 = arith.constant 3 : i32
    %38 = vector.broadcast %c3_i32 : i32 to vector<8x128xi32>
    %39 = arith.cmpi sge, %12, %38 : vector<8x128xi32>
    %40 = arith.andi %30, %39 : vector<8x128xi1>
    %41 = arith.cmpi ne, %36, %37 : vector<8x128xi32>
    %42 = arith.andi %40, %41 : vector<8x128xi1>
    %cst_9 = arith.constant 0.000000e+00 : f32
    %cst_10 = arith.constant -1.000000e+30 : f32
    %43 = vector.broadcast %cst_9 : f32 to vector<8x128xf32>
    %44 = vector.broadcast %cst_10 : f32 to vector<8x128xf32>
    %45 = arith.select %42, %43, %44 : vector<8x128xi1>, vector<8x128xf32>
    %c1_i32_11 = arith.constant 1 : i32
    %46 = vector.broadcast %c1_i32_11 : i32 to vector<8x128xi32>
    %47 = arith.cmpi sge, %12, %46 : vector<8x128xi32>
    %cst_12 = arith.constant 0.000000e+00 : f32
    %cst_13 = arith.constant -1.000000e+30 : f32
    %48 = vector.broadcast %cst_12 : f32 to vector<8x128xf32>
    %49 = vector.broadcast %cst_13 : f32 to vector<8x128xf32>
    %50 = arith.select %47, %48, %49 : vector<8x128xi1>, vector<8x128xf32>
    %cst_14 = arith.constant -1.000000e+30 : f32
    %51 = vector.broadcast %cst_14 : f32 to vector<8x16x1xf32>
    %cst_15 = arith.constant 0.000000e+00 : f32
    %52 = vector.broadcast %cst_15 : f32 to vector<8x16x1xf32>
    %cst_16 = arith.constant 0.000000e+00 : f32
    %53 = vector.broadcast %cst_16 : f32 to vector<8x16x128xf32>
    %c0_17 = arith.constant 0 : index
    %c0_18 = arith.constant 0 : index
    %c0_19 = arith.constant 0 : index
    %54 = vector.load %arg1[%c0_17, %c0_18, %c0_19] : memref<8x16x8xf32, #tpu.memory_space<vmem>>, vector<8x16x8xf32>
    %cst_20 = arith.constant dense<0xFF800000> : vector<8x16xf32>
    %55 = vector.multi_reduction <maximumf>, %54, %cst_20 [2] : vector<8x16x8xf32> to vector<8x16xf32>
    %56 = vector.shape_cast %55 : vector<8x16xf32> to vector<8x16x1xf32>
    %57 = arith.maximumf %51, %56 : vector<8x16x1xf32>
    %58 = vector.broadcast %57 : vector<8x16x1xf32> to vector<8x16x8xf32>
    %59 = arith.subf %54, %58 : vector<8x16x8xf32>
    %60 = math.exp %59 : vector<8x16x8xf32>
    %61 = arith.subf %51, %57 : vector<8x16x1xf32>
    %62 = math.exp %61 : vector<8x16x1xf32>
    %63 = arith.mulf %52, %62 : vector<8x16x1xf32>
    %cst_21 = arith.constant dense<0.000000e+00> : vector<8x16xf32>
    %64 = vector.multi_reduction <add>, %60, %cst_21 [2] : vector<8x16x8xf32> to vector<8x16xf32>
    %65 = vector.shape_cast %64 : vector<8x16xf32> to vector<8x16x1xf32>
    %66 = arith.addf %63, %65 : vector<8x16x1xf32>
    %67 = tpu.iota {dimensions = array<i32: 1>} : vector<8x8x128xi32>
    %c0_i32_22 = arith.constant 0 : i32
    %68 = vector.broadcast %c0_i32_22 : i32 to vector<8x8x128xi32>
    %69 = arith.addi %67, %68 : vector<8x8x128xi32>
    %70 = vector.shape_cast %36 : vector<8x128xi32> to vector<8x1x128xi32>
    %71 = vector.broadcast %70 : vector<8x1x128xi32> to vector<8x8x128xi32>
    %72 = arith.cmpi eq, %69, %71 : vector<8x8x128xi32>
    %73 = arith.extui %72 : vector<8x8x128xi1> to vector<8x8x128xi32>
    %74 = arith.sitofp %73 : vector<8x8x128xi32> to vector<8x8x128xf32>
    %cst_23 = arith.constant dense<0.000000e+00> : vector<8x16x128xf32>
    %75 = tpu.matmul %54, %74, %cst_23 {dimension_numbers = #tpu.dot_dimension_numbers<[2], [1], [1], [2], [0, 0, 0, 1, 1, 2], [0], [0]>} : vector<8x16x8xf32>, vector<8x8x128xf32>, vector<8x16x128xf32> -> vector<8x16x128xf32>
    %76 = arith.addf %53, %75 : vector<8x16x128xf32>
    %77 = math.log %66 : vector<8x16x1xf32>
    %78 = arith.addf %57, %77 : vector<8x16x1xf32>
    %79 = vector.broadcast %78 : vector<8x16x1xf32> to vector<8x16x128xf32>
    %80 = arith.subf %76, %79 : vector<8x16x128xf32>
    %81 = vector.extract_strided_slice %80 {offsets = [0, 0, 0], sizes = [8, 1, 128], strides = [1, 1, 1]} : vector<8x16x128xf32> to vector<8x1x128xf32>
    %82 = vector.shape_cast %81 : vector<8x1x128xf32> to vector<8x128xf32>
    %c0_24 = arith.constant 0 : index
    %c0_25 = arith.constant 0 : index
    %c0_26 = arith.constant 0 : index
    %83 = vector.load %arg5[%c0_24, %c0_25, %c0_26] : memref<16x8x128xf32, #tpu.memory_space<vmem>>, vector<1x8x128xf32>
    %84 = vector.shape_cast %83 : vector<1x8x128xf32> to vector<8x128xf32>
    %85 = vector.shape_cast %82 : vector<8x128xf32> to vector<1x8x128xf32>
    tpu.vector_store %arg5[%c0_24, %c0_25, %c0_26], %85 {strides = array<i32>} : memref<16x8x128xf32, #tpu.memory_space<vmem>>, vector<1x8x128xf32>,
    %86 = vector.extract_strided_slice %80 {offsets = [0, 1, 0], sizes = [8, 1, 128], strides = [1, 1, 1]} : vector<8x16x128xf32> to vector<8x1x128xf32>
    %87 = vector.shape_cast %86 : vector<8x1x128xf32> to vector<8x128xf32>
    %c1 = arith.constant 1 : index
    %c0_27 = arith.constant 0 : index
    %c0_28 = arith.constant 0 : index
    %88 = vector.load %arg5[%c1, %c0_27, %c0_28] : memref<16x8x128xf32, #tpu.memory_space<vmem>>, vector<1x8x128xf32>
    %89 = vector.shape_cast %88 : vector<1x8x128xf32> to vector<8x128xf32>
    %90 = vector.shape_cast %87 : vector<8x128xf32> to vector<1x8x128xf32>
    tpu.vector_store %arg5[%c1, %c0_27, %c0_28], %90 {strides = array<i32>} : memref<16x8x128xf32, #tpu.memory_space<vmem>>, vector<1x8x128xf32>,
    %91 = vector.extract_strided_slice %80 {offsets = [0, 2, 0], sizes = [8, 1, 128], strides = [1, 1, 1]} : vector<8x16x128xf32> to vector<8x1x128xf32>
    %92 = vector.shape_cast %91 : vector<8x1x128xf32> to vector<8x128xf32>
    %c2 = arith.constant 2 : index
    %c0_29 = arith.constant 0 : index
    %c0_30 = arith.constant 0 : index
    %93 = vector.load %arg5[%c2, %c0_29, %c0_30] : memref<16x8x128xf32, #tpu.memory_space<vmem>>, vector<1x8x128xf32>
    %94 = vector.shape_cast %93 : vector<1x8x128xf32> to vector<8x128xf32>
    %95 = vector.shape_cast %92 : vector<8x128xf32> to vector<1x8x128xf32>
    tpu.vector_store %arg5[%c2, %c0_29, %c0_30], %95 {strides = array<i32>} : memref<16x8x128xf32, #tpu.memory_space<vmem>>, vector<1x8x128xf32>,
    %96 = vector.extract_strided_slice %80 {offsets = [0, 3, 0], sizes = [8, 1, 128], strides = [1, 1, 1]} : vector<8x16x128xf32> to vector<8x1x128xf32>
    %97 = vector.shape_cast %96 : vector<8x1x128xf32> to vector<8x128xf32>
    %c3 = arith.constant 3 : index
    %c0_31 = arith.constant 0 : index
    %c0_32 = arith.constant 0 : index
    %98 = vector.load %arg5[%c3, %c0_31, %c0_32] : memref<16x8x128xf32, #tpu.memory_space<vmem>>, vector<1x8x128xf32>
    %99 = vector.shape_cast %98 : vector<1x8x128xf32> to vector<8x128xf32>
    %100 = vector.shape_cast %97 : vector<8x128xf32> to vector<1x8x128xf32>
    tpu.vector_store %arg5[%c3, %c0_31, %c0_32], %100 {strides = array<i32>} : memref<16x8x128xf32, #tpu.memory_space<vmem>>, vector<1x8x128xf32>,
    %101 = vector.extract_strided_slice %80 {offsets = [0, 4, 0], sizes = [8, 1, 128], strides = [1, 1, 1]} : vector<8x16x128xf32> to vector<8x1x128xf32>
    %102 = vector.shape_cast %101 : vector<8x1x128xf32> to vector<8x128xf32>
    %c4 = arith.constant 4 : index
    %c0_33 = arith.constant 0 : index
    %c0_34 = arith.constant 0 : index
    %103 = vector.load %arg5[%c4, %c0_33, %c0_34] : memref<16x8x128xf32, #tpu.memory_space<vmem>>, vector<1x8x128xf32>
    %104 = vector.shape_cast %103 : vector<1x8x128xf32> to vector<8x128xf32>
    %105 = vector.shape_cast %102 : vector<8x128xf32> to vector<1x8x128xf32>
    tpu.vector_store %arg5[%c4, %c0_33, %c0_34], %105 {strides = array<i32>} : memref<16x8x128xf32, #tpu.memory_space<vmem>>, vector<1x8x128xf32>,
    %106 = vector.extract_strided_slice %80 {offsets = [0, 5, 0], sizes = [8, 1, 128], strides = [1, 1, 1]} : vector<8x16x128xf32> to vector<8x1x128xf32>
    %107 = vector.shape_cast %106 : vector<8x1x128xf32> to vector<8x128xf32>
    %c5 = arith.constant 5 : index
    %c0_35 = arith.constant 0 : index
    %c0_36 = arith.constant 0 : index
    %108 = vector.load %arg5[%c5, %c0_35, %c0_36] : memref<16x8x128xf32, #tpu.memory_space<vmem>>, vector<1x8x128xf32>
    %109 = vector.shape_cast %108 : vector<1x8x128xf32> to vector<8x128xf32>
    %110 = vector.shape_cast %107 : vector<8x128xf32> to vector<1x8x128xf32>
    tpu.vector_store %arg5[%c5, %c0_35, %c0_36], %110 {strides = array<i32>} : memref<16x8x128xf32, #tpu.memory_space<vmem>>, vector<1x8x128xf32>,
    %111 = vector.extract_strided_slice %80 {offsets = [0, 6, 0], sizes = [8, 1, 128], strides = [1, 1, 1]} : vector<8x16x128xf32> to vector<8x1x128xf32>
    %112 = vector.shape_cast %111 : vector<8x1x128xf32> to vector<8x128xf32>
    %c6 = arith.constant 6 : index
    %c0_37 = arith.constant 0 : index
    %c0_38 = arith.constant 0 : index
    %113 = vector.load %arg5[%c6, %c0_37, %c0_38] : memref<16x8x128xf32, #tpu.memory_space<vmem>>, vector<1x8x128xf32>
    %114 = vector.shape_cast %113 : vector<1x8x128xf32> to vector<8x128xf32>
    %115 = vector.shape_cast %112 : vector<8x128xf32> to vector<1x8x128xf32>
    tpu.vector_store %arg5[%c6, %c0_37, %c0_38], %115 {strides = array<i32>} : memref<16x8x128xf32, #tpu.memory_space<vmem>>, vector<1x8x128xf32>,
    %116 = vector.extract_strided_slice %80 {offsets = [0, 7, 0], sizes = [8, 1, 128], strides = [1, 1, 1]} : vector<8x16x128xf32> to vector<8x1x128xf32>
    %117 = vector.shape_cast %116 : vector<8x1x128xf32> to vector<8x128xf32>
    %c7 = arith.constant 7 : index
    %c0_39 = arith.constant 0 : index
    %c0_40 = arith.constant 0 : index
    %118 = vector.load %arg5[%c7, %c0_39, %c0_40] : memref<16x8x128xf32, #tpu.memory_space<vmem>>, vector<1x8x128xf32>
    %119 = vector.shape_cast %118 : vector<1x8x128xf32> to vector<8x128xf32>
    %120 = vector.shape_cast %117 : vector<8x128xf32> to vector<1x8x128xf32>
    tpu.vector_store %arg5[%c7, %c0_39, %c0_40], %120 {strides = array<i32>} : memref<16x8x128xf32, #tpu.memory_space<vmem>>, vector<1x8x128xf32>,
    %121 = vector.extract_strided_slice %80 {offsets = [0, 8, 0], sizes = [8, 1, 128], strides = [1, 1, 1]} : vector<8x16x128xf32> to vector<8x1x128xf32>
    %122 = vector.shape_cast %121 : vector<8x1x128xf32> to vector<8x128xf32>
    %c8 = arith.constant 8 : index
    %c0_41 = arith.constant 0 : index
    %c0_42 = arith.constant 0 : index
    %123 = vector.load %arg5[%c8, %c0_41, %c0_42] : memref<16x8x128xf32, #tpu.memory_space<vmem>>, vector<1x8x128xf32>
    %124 = vector.shape_cast %123 : vector<1x8x128xf32> to vector<8x128xf32>
    %125 = vector.shape_cast %122 : vector<8x128xf32> to vector<1x8x128xf32>
    tpu.vector_store %arg5[%c8, %c0_41, %c0_42], %125 {strides = array<i32>} : memref<16x8x128xf32, #tpu.memory_space<vmem>>, vector<1x8x128xf32>,
    %126 = vector.extract_strided_slice %80 {offsets = [0, 9, 0], sizes = [8, 1, 128], strides = [1, 1, 1]} : vector<8x16x128xf32> to vector<8x1x128xf32>
    %127 = vector.shape_cast %126 : vector<8x1x128xf32> to vector<8x128xf32>
    %c9 = arith.constant 9 : index
    %c0_43 = arith.constant 0 : index
    %c0_44 = arith.constant 0 : index
    %128 = vector.load %arg5[%c9, %c0_43, %c0_44] : memref<16x8x128xf32, #tpu.memory_space<vmem>>, vector<1x8x128xf32>
    %129 = vector.shape_cast %128 : vector<1x8x128xf32> to vector<8x128xf32>
    %130 = vector.shape_cast %127 : vector<8x128xf32> to vector<1x8x128xf32>
    tpu.vector_store %arg5[%c9, %c0_43, %c0_44], %130 {strides = array<i32>} : memref<16x8x128xf32, #tpu.memory_space<vmem>>, vector<1x8x128xf32>,
    %131 = vector.extract_strided_slice %80 {offsets = [0, 10, 0], sizes = [8, 1, 128], strides = [1, 1, 1]} : vector<8x16x128xf32> to vector<8x1x128xf32>
    %132 = vector.shape_cast %131 : vector<8x1x128xf32> to vector<8x128xf32>
    %c10 = arith.constant 10 : index
    %c0_45 = arith.constant 0 : index
    %c0_46 = arith.constant 0 : index
    %133 = vector.load %arg5[%c10, %c0_45, %c0_46] : memref<16x8x128xf32, #tpu.memory_space<vmem>>, vector<1x8x128xf32>
    %134 = vector.shape_cast %133 : vector<1x8x128xf32> to vector<8x128xf32>
    %135 = vector.shape_cast %132 : vector<8x128xf32> to vector<1x8x128xf32>
    tpu.vector_store %arg5[%c10, %c0_45, %c0_46], %135 {strides = array<i32>} : memref<16x8x128xf32, #tpu.memory_space<vmem>>, vector<1x8x128xf32>,
    %136 = vector.extract_strided_slice %80 {offsets = [0, 11, 0], sizes = [8, 1, 128], strides = [1, 1, 1]} : vector<8x16x128xf32> to vector<8x1x128xf32>
    %137 = vector.shape_cast %136 : vector<8x1x128xf32> to vector<8x128xf32>
    %c11 = arith.constant 11 : index
    %c0_47 = arith.constant 0 : index
    %c0_48 = arith.constant 0 : index
    %138 = vector.load %arg5[%c11, %c0_47, %c0_48] : memref<16x8x128xf32, #tpu.memory_space<vmem>>, vector<1x8x128xf32>
    %139 = vector.shape_cast %138 : vector<1x8x128xf32> to vector<8x128xf32>
    %140 = vector.shape_cast %137 : vector<8x128xf32> to vector<1x8x128xf32>
    tpu.vector_store %arg5[%c11, %c0_47, %c0_48], %140 {strides = array<i32>} : memref<16x8x128xf32, #tpu.memory_space<vmem>>, vector<1x8x128xf32>,
    %141 = vector.extract_strided_slice %80 {offsets = [0, 12, 0], sizes = [8, 1, 128], strides = [1, 1, 1]} : vector<8x16x128xf32> to vector<8x1x128xf32>
    %142 = vector.shape_cast %141 : vector<8x1x128xf32> to vector<8x128xf32>
    %c12 = arith.constant 12 : index
    %c0_49 = arith.constant 0 : index
    %c0_50 = arith.constant 0 : index
    %143 = vector.load %arg5[%c12, %c0_49, %c0_50] : memref<16x8x128xf32, #tpu.memory_space<vmem>>, vector<1x8x128xf32>
    %144 = vector.shape_cast %143 : vector<1x8x128xf32> to vector<8x128xf32>
    %145 = vector.shape_cast %142 : vector<8x128xf32> to vector<1x8x128xf32>
    tpu.vector_store %arg5[%c12, %c0_49, %c0_50], %145 {strides = array<i32>} : memref<16x8x128xf32, #tpu.memory_space<vmem>>, vector<1x8x128xf32>,
    %146 = vector.extract_strided_slice %80 {offsets = [0, 13, 0], sizes = [8, 1, 128], strides = [1, 1, 1]} : vector<8x16x128xf32> to vector<8x1x128xf32>
    %147 = vector.shape_cast %146 : vector<8x1x128xf32> to vector<8x128xf32>
    %c13 = arith.constant 13 : index
    %c0_51 = arith.constant 0 : index
    %c0_52 = arith.constant 0 : index
    %148 = vector.load %arg5[%c13, %c0_51, %c0_52] : memref<16x8x128xf32, #tpu.memory_space<vmem>>, vector<1x8x128xf32>
    %149 = vector.shape_cast %148 : vector<1x8x128xf32> to vector<8x128xf32>
    %150 = vector.shape_cast %147 : vector<8x128xf32> to vector<1x8x128xf32>
    tpu.vector_store %arg5[%c13, %c0_51, %c0_52], %150 {strides = array<i32>} : memref<16x8x128xf32, #tpu.memory_space<vmem>>, vector<1x8x128xf32>,
    %151 = vector.extract_strided_slice %80 {offsets = [0, 14, 0], sizes = [8, 1, 128], strides = [1, 1, 1]} : vector<8x16x128xf32> to vector<8x1x128xf32>
    %152 = vector.shape_cast %151 : vector<8x1x128xf32> to vector<8x128xf32>
    %c14 = arith.constant 14 : index
    %c0_53 = arith.constant 0 : index
    %c0_54 = arith.constant 0 : index
    %153 = vector.load %arg5[%c14, %c0_53, %c0_54] : memref<16x8x128xf32, #tpu.memory_space<vmem>>, vector<1x8x128xf32>
    %154 = vector.shape_cast %153 : vector<1x8x128xf32> to vector<8x128xf32>
    %155 = vector.shape_cast %152 : vector<8x128xf32> to vector<1x8x128xf32>
    tpu.vector_store %arg5[%c14, %c0_53, %c0_54], %155 {strides = array<i32>} : memref<16x8x128xf32, #tpu.memory_space<vmem>>, vector<1x8x128xf32>,
    %156 = vector.extract_strided_slice %80 {offsets = [0, 15, 0], sizes = [8, 1, 128], strides = [1, 1, 1]} : vector<8x16x128xf32> to vector<8x1x128xf32>
    %157 = vector.shape_cast %156 : vector<8x1x128xf32> to vector<8x128xf32>
    %c15 = arith.constant 15 : index
    %c0_55 = arith.constant 0 : index
    %c0_56 = arith.constant 0 : index
    %158 = vector.load %arg5[%c15, %c0_55, %c0_56] : memref<16x8x128xf32, #tpu.memory_space<vmem>>, vector<1x8x128xf32>
    %159 = vector.shape_cast %158 : vector<1x8x128xf32> to vector<8x128xf32>
    %160 = vector.shape_cast %157 : vector<8x128xf32> to vector<1x8x128xf32>
    tpu.vector_store %arg5[%c15, %c0_55, %c0_56], %160 {strides = array<i32>} : memref<16x8x128xf32, #tpu.memory_space<vmem>>, vector<1x8x128xf32>,
    %c2_i32_57 = arith.constant 2 : i32
    %161 = vector.broadcast %c2_i32_57 : i32 to vector<8x128xi32>
    %162 = arith.cmpi slt, %12, %161 : vector<8x128xi32>
    %c0_58 = arith.constant 0 : index
    %c0_59 = arith.constant 0 : index
    %c0_60 = arith.constant 0 : index
    %163 = vector.load %arg5[%c0_58, %c0_59, %c0_60] : memref<16x8x128xf32, #tpu.memory_space<vmem>>, vector<1x8x128xf32>
    %164 = vector.shape_cast %163 : vector<1x8x128xf32> to vector<8x128xf32>
    %cst_61 = arith.constant -1.000000e+30 : f32
    %165 = vector.broadcast %cst_61 : f32 to vector<8x128xf32>
    %166 = arith.select %162, %164, %165 : vector<8x128xi1>, vector<8x128xf32>
    %c1_i32_62 = arith.constant 1 : i32
    %167 = arith.index_cast %c1_i32_62 : i32 to index
    %c0_63 = arith.constant 0 : index
    %c0_64 = arith.constant 0 : index
    %168 = vector.load %arg5[%167, %c0_63, %c0_64] : memref<16x8x128xf32, #tpu.memory_space<vmem>>, vector<1x8x128xf32>
    %169 = vector.shape_cast %168 : vector<1x8x128xf32> to vector<8x128xf32>
    %c1_i32_65 = arith.constant 1 : i32
    %170 = tpu.dynamic_rotate %166 by %c1_i32_65 dim 1 : vector<8x128xf32>, i32 -> vector<8x128xf32>
    %171 = arith.addf %170, %50 : vector<8x128xf32>
    %c2_i32_66 = arith.constant 2 : i32
    %172 = tpu.dynamic_rotate %166 by %c2_i32_66 dim 1 : vector<8x128xf32>, i32 -> vector<8x128xf32>
    %173 = arith.addf %172, %45 : vector<8x128xf32>
    %174 = arith.maximumf %166, %171 : vector<8x128xf32>
    %175 = arith.maximumf %174, %173 : vector<8x128xf32>
    %176 = arith.subf %166, %175 : vector<8x128xf32>
    %177 = math.exp %176 : vector<8x128xf32>
    %178 = arith.subf %171, %175 : vector<8x128xf32>
    %179 = math.exp %178 : vector<8x128xf32>
    %180 = arith.addf %177, %179 : vector<8x128xf32>
    %181 = arith.subf %173, %175 : vector<8x128xf32>
    %182 = math.exp %181 : vector<8x128xf32>
    %183 = arith.addf %180, %182 : vector<8x128xf32>
    %184 = math.log %183 : vector<8x128xf32>
    %185 = arith.addf %175, %184 : vector<8x128xf32>
    %186 = arith.addf %185, %169 : vector<8x128xf32>
    %c2_i32_67 = arith.constant 2 : i32
    %187 = arith.index_cast %c2_i32_67 : i32 to index
    %c0_68 = arith.constant 0 : index
    %c0_69 = arith.constant 0 : index
    %188 = vector.load %arg5[%187, %c0_68, %c0_69] : memref<16x8x128xf32, #tpu.memory_space<vmem>>, vector<1x8x128xf32>
    %189 = vector.shape_cast %188 : vector<1x8x128xf32> to vector<8x128xf32>
    %c1_i32_70 = arith.constant 1 : i32
    %190 = tpu.dynamic_rotate %186 by %c1_i32_70 dim 1 : vector<8x128xf32>, i32 -> vector<8x128xf32>
    %191 = arith.addf %190, %50 : vector<8x128xf32>
    %c2_i32_71 = arith.constant 2 : i32
    %192 = tpu.dynamic_rotate %186 by %c2_i32_71 dim 1 : vector<8x128xf32>, i32 -> vector<8x128xf32>
    %193 = arith.addf %192, %45 : vector<8x128xf32>
    %194 = arith.maximumf %186, %191 : vector<8x128xf32>
    %195 = arith.maximumf %194, %193 : vector<8x128xf32>
    %196 = arith.subf %186, %195 : vector<8x128xf32>
    %197 = math.exp %196 : vector<8x128xf32>
    %198 = arith.subf %191, %195 : vector<8x128xf32>
    %199 = math.exp %198 : vector<8x128xf32>
    %200 = arith.addf %197, %199 : vector<8x128xf32>
    %201 = arith.subf %193, %195 : vector<8x128xf32>
    %202 = math.exp %201 : vector<8x128xf32>
    %203 = arith.addf %200, %202 : vector<8x128xf32>
    %204 = math.log %203 : vector<8x128xf32>
    %205 = arith.addf %195, %204 : vector<8x128xf32>
    %206 = arith.addf %205, %189 : vector<8x128xf32>
    %c3_i32_72 = arith.constant 3 : i32
    %207 = arith.index_cast %c3_i32_72 : i32 to index
    %c0_73 = arith.constant 0 : index
    %c0_74 = arith.constant 0 : index
    %208 = vector.load %arg5[%207, %c0_73, %c0_74] : memref<16x8x128xf32, #tpu.memory_space<vmem>>, vector<1x8x128xf32>
    %209 = vector.shape_cast %208 : vector<1x8x128xf32> to vector<8x128xf32>
    %c1_i32_75 = arith.constant 1 : i32
    %210 = tpu.dynamic_rotate %206 by %c1_i32_75 dim 1 : vector<8x128xf32>, i32 -> vector<8x128xf32>
    %211 = arith.addf %210, %50 : vector<8x128xf32>
    %c2_i32_76 = arith.constant 2 : i32
    %212 = tpu.dynamic_rotate %206 by %c2_i32_76 dim 1 : vector<8x128xf32>, i32 -> vector<8x128xf32>
    %213 = arith.addf %212, %45 : vector<8x128xf32>
    %214 = arith.maximumf %206, %211 : vector<8x128xf32>
    %215 = arith.maximumf %214, %213 : vector<8x128xf32>
    %216 = arith.subf %206, %215 : vector<8x128xf32>
    %217 = math.exp %216 : vector<8x128xf32>
    %218 = arith.subf %211, %215 : vector<8x128xf32>
    %219 = math.exp %218 : vector<8x128xf32>
    %220 = arith.addf %217, %219 : vector<8x128xf32>
    %221 = arith.subf %213, %215 : vector<8x128xf32>
    %222 = math.exp %221 : vector<8x128xf32>
    %223 = arith.addf %220, %222 : vector<8x128xf32>
    %224 = math.log %223 : vector<8x128xf32>
    %225 = arith.addf %215, %224 : vector<8x128xf32>
    %226 = arith.addf %225, %209 : vector<8x128xf32>
    %c4_i32 = arith.constant 4 : i32
    %227 = arith.index_cast %c4_i32 : i32 to index
    %c0_77 = arith.constant 0 : index
    %c0_78 = arith.constant 0 : index
    %228 = vector.load %arg5[%227, %c0_77, %c0_78] : memref<16x8x128xf32, #tpu.memory_space<vmem>>, vector<1x8x128xf32>
    %229 = vector.shape_cast %228 : vector<1x8x128xf32> to vector<8x128xf32>
    %c1_i32_79 = arith.constant 1 : i32
    %230 = tpu.dynamic_rotate %226 by %c1_i32_79 dim 1 : vector<8x128xf32>, i32 -> vector<8x128xf32>
    %231 = arith.addf %230, %50 : vector<8x128xf32>
    %c2_i32_80 = arith.constant 2 : i32
    %232 = tpu.dynamic_rotate %226 by %c2_i32_80 dim 1 : vector<8x128xf32>, i32 -> vector<8x128xf32>
    %233 = arith.addf %232, %45 : vector<8x128xf32>
    %234 = arith.maximumf %226, %231 : vector<8x128xf32>
    %235 = arith.maximumf %234, %233 : vector<8x128xf32>
    %236 = arith.subf %226, %235 : vector<8x128xf32>
    %237 = math.exp %236 : vector<8x128xf32>
    %238 = arith.subf %231, %235 : vector<8x128xf32>
    %239 = math.exp %238 : vector<8x128xf32>
    %240 = arith.addf %237, %239 : vector<8x128xf32>
    %241 = arith.subf %233, %235 : vector<8x128xf32>
    %242 = math.exp %241 : vector<8x128xf32>
    %243 = arith.addf %240, %242 : vector<8x128xf32>
    %244 = math.log %243 : vector<8x128xf32>
    %245 = arith.addf %235, %244 : vector<8x128xf32>
    %246 = arith.addf %245, %229 : vector<8x128xf32>
    %c5_i32 = arith.constant 5 : i32
    %247 = arith.index_cast %c5_i32 : i32 to index
    %c0_81 = arith.constant 0 : index
    %c0_82 = arith.constant 0 : index
    %248 = vector.load %arg5[%247, %c0_81, %c0_82] : memref<16x8x128xf32, #tpu.memory_space<vmem>>, vector<1x8x128xf32>
    %249 = vector.shape_cast %248 : vector<1x8x128xf32> to vector<8x128xf32>
    %c1_i32_83 = arith.constant 1 : i32
    %250 = tpu.dynamic_rotate %246 by %c1_i32_83 dim 1 : vector<8x128xf32>, i32 -> vector<8x128xf32>
    %251 = arith.addf %250, %50 : vector<8x128xf32>
    %c2_i32_84 = arith.constant 2 : i32
    %252 = tpu.dynamic_rotate %246 by %c2_i32_84 dim 1 : vector<8x128xf32>, i32 -> vector<8x128xf32>
    %253 = arith.addf %252, %45 : vector<8x128xf32>
    %254 = arith.maximumf %246, %251 : vector<8x128xf32>
    %255 = arith.maximumf %254, %253 : vector<8x128xf32>
    %256 = arith.subf %246, %255 : vector<8x128xf32>
    %257 = math.exp %256 : vector<8x128xf32>
    %258 = arith.subf %251, %255 : vector<8x128xf32>
    %259 = math.exp %258 : vector<8x128xf32>
    %260 = arith.addf %257, %259 : vector<8x128xf32>
    %261 = arith.subf %253, %255 : vector<8x128xf32>
    %262 = math.exp %261 : vector<8x128xf32>
    %263 = arith.addf %260, %262 : vector<8x128xf32>
    %264 = math.log %263 : vector<8x128xf32>
    %265 = arith.addf %255, %264 : vector<8x128xf32>
    %266 = arith.addf %265, %249 : vector<8x128xf32>
    %c6_i32 = arith.constant 6 : i32
    %267 = arith.index_cast %c6_i32 : i32 to index
    %c0_85 = arith.constant 0 : index
    %c0_86 = arith.constant 0 : index
    %268 = vector.load %arg5[%267, %c0_85, %c0_86] : memref<16x8x128xf32, #tpu.memory_space<vmem>>, vector<1x8x128xf32>
    %269 = vector.shape_cast %268 : vector<1x8x128xf32> to vector<8x128xf32>
    %c1_i32_87 = arith.constant 1 : i32
    %270 = tpu.dynamic_rotate %266 by %c1_i32_87 dim 1 : vector<8x128xf32>, i32 -> vector<8x128xf32>
    %271 = arith.addf %270, %50 : vector<8x128xf32>
    %c2_i32_88 = arith.constant 2 : i32
    %272 = tpu.dynamic_rotate %266 by %c2_i32_88 dim 1 : vector<8x128xf32>, i32 -> vector<8x128xf32>
    %273 = arith.addf %272, %45 : vector<8x128xf32>
    %274 = arith.maximumf %266, %271 : vector<8x128xf32>
    %275 = arith.maximumf %274, %273 : vector<8x128xf32>
    %276 = arith.subf %266, %275 : vector<8x128xf32>
    %277 = math.exp %276 : vector<8x128xf32>
    %278 = arith.subf %271, %275 : vector<8x128xf32>
    %279 = math.exp %278 : vector<8x128xf32>
    %280 = arith.addf %277, %279 : vector<8x128xf32>
    %281 = arith.subf %273, %275 : vector<8x128xf32>
    %282 = math.exp %281 : vector<8x128xf32>
    %283 = arith.addf %280, %282 : vector<8x128xf32>
    %284 = math.log %283 : vector<8x128xf32>
    %285 = arith.addf %275, %284 : vector<8x128xf32>
    %286 = arith.addf %285, %269 : vector<8x128xf32>
    %c7_i32 = arith.constant 7 : i32
    %287 = arith.index_cast %c7_i32 : i32 to index
    %c0_89 = arith.constant 0 : index
    %c0_90 = arith.constant 0 : index
    %288 = vector.load %arg5[%287, %c0_89, %c0_90] : memref<16x8x128xf32, #tpu.memory_space<vmem>>, vector<1x8x128xf32>
    %289 = vector.shape_cast %288 : vector<1x8x128xf32> to vector<8x128xf32>
    %c1_i32_91 = arith.constant 1 : i32
    %290 = tpu.dynamic_rotate %286 by %c1_i32_91 dim 1 : vector<8x128xf32>, i32 -> vector<8x128xf32>
    %291 = arith.addf %290, %50 : vector<8x128xf32>
    %c2_i32_92 = arith.constant 2 : i32
    %292 = tpu.dynamic_rotate %286 by %c2_i32_92 dim 1 : vector<8x128xf32>, i32 -> vector<8x128xf32>
    %293 = arith.addf %292, %45 : vector<8x128xf32>
    %294 = arith.maximumf %286, %291 : vector<8x128xf32>
    %295 = arith.maximumf %294, %293 : vector<8x128xf32>
    %296 = arith.subf %286, %295 : vector<8x128xf32>
    %297 = math.exp %296 : vector<8x128xf32>
    %298 = arith.subf %291, %295 : vector<8x128xf32>
    %299 = math.exp %298 : vector<8x128xf32>
    %300 = arith.addf %297, %299 : vector<8x128xf32>
    %301 = arith.subf %293, %295 : vector<8x128xf32>
    %302 = math.exp %301 : vector<8x128xf32>
    %303 = arith.addf %300, %302 : vector<8x128xf32>
    %304 = math.log %303 : vector<8x128xf32>
    %305 = arith.addf %295, %304 : vector<8x128xf32>
    %306 = arith.addf %305, %289 : vector<8x128xf32>
    %c8_i32 = arith.constant 8 : i32
    %307 = arith.index_cast %c8_i32 : i32 to index
    %c0_93 = arith.constant 0 : index
    %c0_94 = arith.constant 0 : index
    %308 = vector.load %arg5[%307, %c0_93, %c0_94] : memref<16x8x128xf32, #tpu.memory_space<vmem>>, vector<1x8x128xf32>
    %309 = vector.shape_cast %308 : vector<1x8x128xf32> to vector<8x128xf32>
    %c1_i32_95 = arith.constant 1 : i32
    %310 = tpu.dynamic_rotate %306 by %c1_i32_95 dim 1 : vector<8x128xf32>, i32 -> vector<8x128xf32>
    %311 = arith.addf %310, %50 : vector<8x128xf32>
    %c2_i32_96 = arith.constant 2 : i32
    %312 = tpu.dynamic_rotate %306 by %c2_i32_96 dim 1 : vector<8x128xf32>, i32 -> vector<8x128xf32>
    %313 = arith.addf %312, %45 : vector<8x128xf32>
    %314 = arith.maximumf %306, %311 : vector<8x128xf32>
    %315 = arith.maximumf %314, %313 : vector<8x128xf32>
    %316 = arith.subf %306, %315 : vector<8x128xf32>
    %317 = math.exp %316 : vector<8x128xf32>
    %318 = arith.subf %311, %315 : vector<8x128xf32>
    %319 = math.exp %318 : vector<8x128xf32>
    %320 = arith.addf %317, %319 : vector<8x128xf32>
    %321 = arith.subf %313, %315 : vector<8x128xf32>
    %322 = math.exp %321 : vector<8x128xf32>
    %323 = arith.addf %320, %322 : vector<8x128xf32>
    %324 = math.log %323 : vector<8x128xf32>
    %325 = arith.addf %315, %324 : vector<8x128xf32>
    %326 = arith.addf %325, %309 : vector<8x128xf32>
    %c9_i32 = arith.constant 9 : i32
    %327 = arith.index_cast %c9_i32 : i32 to index
    %c0_97 = arith.constant 0 : index
    %c0_98 = arith.constant 0 : index
    %328 = vector.load %arg5[%327, %c0_97, %c0_98] : memref<16x8x128xf32, #tpu.memory_space<vmem>>, vector<1x8x128xf32>
    %329 = vector.shape_cast %328 : vector<1x8x128xf32> to vector<8x128xf32>
    %c1_i32_99 = arith.constant 1 : i32
    %330 = tpu.dynamic_rotate %326 by %c1_i32_99 dim 1 : vector<8x128xf32>, i32 -> vector<8x128xf32>
    %331 = arith.addf %330, %50 : vector<8x128xf32>
    %c2_i32_100 = arith.constant 2 : i32
    %332 = tpu.dynamic_rotate %326 by %c2_i32_100 dim 1 : vector<8x128xf32>, i32 -> vector<8x128xf32>
    %333 = arith.addf %332, %45 : vector<8x128xf32>
    %334 = arith.maximumf %326, %331 : vector<8x128xf32>
    %335 = arith.maximumf %334, %333 : vector<8x128xf32>
    %336 = arith.subf %326, %335 : vector<8x128xf32>
    %337 = math.exp %336 : vector<8x128xf32>
    %338 = arith.subf %331, %335 : vector<8x128xf32>
    %339 = math.exp %338 : vector<8x128xf32>
    %340 = arith.addf %337, %339 : vector<8x128xf32>
    %341 = arith.subf %333, %335 : vector<8x128xf32>
    %342 = math.exp %341 : vector<8x128xf32>
    %343 = arith.addf %340, %342 : vector<8x128xf32>
    %344 = math.log %343 : vector<8x128xf32>
    %345 = arith.addf %335, %344 : vector<8x128xf32>
    %346 = arith.addf %345, %329 : vector<8x128xf32>
    %c10_i32 = arith.constant 10 : i32
    %347 = arith.index_cast %c10_i32 : i32 to index
    %c0_101 = arith.constant 0 : index
    %c0_102 = arith.constant 0 : index
    %348 = vector.load %arg5[%347, %c0_101, %c0_102] : memref<16x8x128xf32, #tpu.memory_space<vmem>>, vector<1x8x128xf32>
    %349 = vector.shape_cast %348 : vector<1x8x128xf32> to vector<8x128xf32>
    %c1_i32_103 = arith.constant 1 : i32
    %350 = tpu.dynamic_rotate %346 by %c1_i32_103 dim 1 : vector<8x128xf32>, i32 -> vector<8x128xf32>
    %351 = arith.addf %350, %50 : vector<8x128xf32>
    %c2_i32_104 = arith.constant 2 : i32
    %352 = tpu.dynamic_rotate %346 by %c2_i32_104 dim 1 : vector<8x128xf32>, i32 -> vector<8x128xf32>
    %353 = arith.addf %352, %45 : vector<8x128xf32>
    %354 = arith.maximumf %346, %351 : vector<8x128xf32>
    %355 = arith.maximumf %354, %353 : vector<8x128xf32>
    %356 = arith.subf %346, %355 : vector<8x128xf32>
    %357 = math.exp %356 : vector<8x128xf32>
    %358 = arith.subf %351, %355 : vector<8x128xf32>
    %359 = math.exp %358 : vector<8x128xf32>
    %360 = arith.addf %357, %359 : vector<8x128xf32>
    %361 = arith.subf %353, %355 : vector<8x128xf32>
    %362 = math.exp %361 : vector<8x128xf32>
    %363 = arith.addf %360, %362 : vector<8x128xf32>
    %364 = math.log %363 : vector<8x128xf32>
    %365 = arith.addf %355, %364 : vector<8x128xf32>
    %366 = arith.addf %365, %349 : vector<8x128xf32>
    %c11_i32 = arith.constant 11 : i32
    %367 = arith.index_cast %c11_i32 : i32 to index
    %c0_105 = arith.constant 0 : index
    %c0_106 = arith.constant 0 : index
    %368 = vector.load %arg5[%367, %c0_105, %c0_106] : memref<16x8x128xf32, #tpu.memory_space<vmem>>, vector<1x8x128xf32>
    %369 = vector.shape_cast %368 : vector<1x8x128xf32> to vector<8x128xf32>
    %c1_i32_107 = arith.constant 1 : i32
    %370 = tpu.dynamic_rotate %366 by %c1_i32_107 dim 1 : vector<8x128xf32>, i32 -> vector<8x128xf32>
    %371 = arith.addf %370, %50 : vector<8x128xf32>
    %c2_i32_108 = arith.constant 2 : i32
    %372 = tpu.dynamic_rotate %366 by %c2_i32_108 dim 1 : vector<8x128xf32>, i32 -> vector<8x128xf32>
    %373 = arith.addf %372, %45 : vector<8x128xf32>
    %374 = arith.maximumf %366, %371 : vector<8x128xf32>
    %375 = arith.maximumf %374, %373 : vector<8x128xf32>
    %376 = arith.subf %366, %375 : vector<8x128xf32>
    %377 = math.exp %376 : vector<8x128xf32>
    %378 = arith.subf %371, %375 : vector<8x128xf32>
    %379 = math.exp %378 : vector<8x128xf32>
    %380 = arith.addf %377, %379 : vector<8x128xf32>
    %381 = arith.subf %373, %375 : vector<8x128xf32>
    %382 = math.exp %381 : vector<8x128xf32>
    %383 = arith.addf %380, %382 : vector<8x128xf32>
    %384 = math.log %383 : vector<8x128xf32>
    %385 = arith.addf %375, %384 : vector<8x128xf32>
    %386 = arith.addf %385, %369 : vector<8x128xf32>
    %c12_i32_109 = arith.constant 12 : i32
    %387 = arith.index_cast %c12_i32_109 : i32 to index
    %c0_110 = arith.constant 0 : index
    %c0_111 = arith.constant 0 : index
    %388 = vector.load %arg5[%387, %c0_110, %c0_111] : memref<16x8x128xf32, #tpu.memory_space<vmem>>, vector<1x8x128xf32>
    %389 = vector.shape_cast %388 : vector<1x8x128xf32> to vector<8x128xf32>
    %c1_i32_112 = arith.constant 1 : i32
    %390 = tpu.dynamic_rotate %386 by %c1_i32_112 dim 1 : vector<8x128xf32>, i32 -> vector<8x128xf32>
    %391 = arith.addf %390, %50 : vector<8x128xf32>
    %c2_i32_113 = arith.constant 2 : i32
    %392 = tpu.dynamic_rotate %386 by %c2_i32_113 dim 1 : vector<8x128xf32>, i32 -> vector<8x128xf32>
    %393 = arith.addf %392, %45 : vector<8x128xf32>
    %394 = arith.maximumf %386, %391 : vector<8x128xf32>
    %395 = arith.maximumf %394, %393 : vector<8x128xf32>
    %396 = arith.subf %386, %395 : vector<8x128xf32>
    %397 = math.exp %396 : vector<8x128xf32>
    %398 = arith.subf %391, %395 : vector<8x128xf32>
    %399 = math.exp %398 : vector<8x128xf32>
    %400 = arith.addf %397, %399 : vector<8x128xf32>
    %401 = arith.subf %393, %395 : vector<8x128xf32>
    %402 = math.exp %401 : vector<8x128xf32>
    %403 = arith.addf %400, %402 : vector<8x128xf32>
    %404 = math.log %403 : vector<8x128xf32>
    %405 = arith.addf %395, %404 : vector<8x128xf32>
    %406 = arith.addf %405, %389 : vector<8x128xf32>
    %c13_i32 = arith.constant 13 : i32
    %407 = arith.index_cast %c13_i32 : i32 to index
    %c0_114 = arith.constant 0 : index
    %c0_115 = arith.constant 0 : index
    %408 = vector.load %arg5[%407, %c0_114, %c0_115] : memref<16x8x128xf32, #tpu.memory_space<vmem>>, vector<1x8x128xf32>
    %409 = vector.shape_cast %408 : vector<1x8x128xf32> to vector<8x128xf32>
    %c1_i32_116 = arith.constant 1 : i32
    %410 = tpu.dynamic_rotate %406 by %c1_i32_116 dim 1 : vector<8x128xf32>, i32 -> vector<8x128xf32>
    %411 = arith.addf %410, %50 : vector<8x128xf32>
    %c2_i32_117 = arith.constant 2 : i32
    %412 = tpu.dynamic_rotate %406 by %c2_i32_117 dim 1 : vector<8x128xf32>, i32 -> vector<8x128xf32>
    %413 = arith.addf %412, %45 : vector<8x128xf32>
    %414 = arith.maximumf %406, %411 : vector<8x128xf32>
    %415 = arith.maximumf %414, %413 : vector<8x128xf32>
    %416 = arith.subf %406, %415 : vector<8x128xf32>
    %417 = math.exp %416 : vector<8x128xf32>
    %418 = arith.subf %411, %415 : vector<8x128xf32>
    %419 = math.exp %418 : vector<8x128xf32>
    %420 = arith.addf %417, %419 : vector<8x128xf32>
    %421 = arith.subf %413, %415 : vector<8x128xf32>
    %422 = math.exp %421 : vector<8x128xf32>
    %423 = arith.addf %420, %422 : vector<8x128xf32>
    %424 = math.log %423 : vector<8x128xf32>
    %425 = arith.addf %415, %424 : vector<8x128xf32>
    %426 = arith.addf %425, %409 : vector<8x128xf32>
    %c14_i32 = arith.constant 14 : i32
    %427 = arith.index_cast %c14_i32 : i32 to index
    %c0_118 = arith.constant 0 : index
    %c0_119 = arith.constant 0 : index
    %428 = vector.load %arg5[%427, %c0_118, %c0_119] : memref<16x8x128xf32, #tpu.memory_space<vmem>>, vector<1x8x128xf32>
    %429 = vector.shape_cast %428 : vector<1x8x128xf32> to vector<8x128xf32>
    %c1_i32_120 = arith.constant 1 : i32
    %430 = tpu.dynamic_rotate %426 by %c1_i32_120 dim 1 : vector<8x128xf32>, i32 -> vector<8x128xf32>
    %431 = arith.addf %430, %50 : vector<8x128xf32>
    %c2_i32_121 = arith.constant 2 : i32
    %432 = tpu.dynamic_rotate %426 by %c2_i32_121 dim 1 : vector<8x128xf32>, i32 -> vector<8x128xf32>
    %433 = arith.addf %432, %45 : vector<8x128xf32>
    %434 = arith.maximumf %426, %431 : vector<8x128xf32>
    %435 = arith.maximumf %434, %433 : vector<8x128xf32>
    %436 = arith.subf %426, %435 : vector<8x128xf32>
    %437 = math.exp %436 : vector<8x128xf32>
    %438 = arith.subf %431, %435 : vector<8x128xf32>
    %439 = math.exp %438 : vector<8x128xf32>
    %440 = arith.addf %437, %439 : vector<8x128xf32>
    %441 = arith.subf %433, %435 : vector<8x128xf32>
    %442 = math.exp %441 : vector<8x128xf32>
    %443 = arith.addf %440, %442 : vector<8x128xf32>
    %444 = math.log %443 : vector<8x128xf32>
    %445 = arith.addf %435, %444 : vector<8x128xf32>
    %446 = arith.addf %445, %429 : vector<8x128xf32>
    %c15_i32 = arith.constant 15 : i32
    %447 = arith.index_cast %c15_i32 : i32 to index
    %c0_122 = arith.constant 0 : index
    %c0_123 = arith.constant 0 : index
    %448 = vector.load %arg5[%447, %c0_122, %c0_123] : memref<16x8x128xf32, #tpu.memory_space<vmem>>, vector<1x8x128xf32>
    %449 = vector.shape_cast %448 : vector<1x8x128xf32> to vector<8x128xf32>
    %c1_i32_124 = arith.constant 1 : i32
    %450 = tpu.dynamic_rotate %446 by %c1_i32_124 dim 1 : vector<8x128xf32>, i32 -> vector<8x128xf32>
    %451 = arith.addf %450, %50 : vector<8x128xf32>
    %c2_i32_125 = arith.constant 2 : i32
    %452 = tpu.dynamic_rotate %446 by %c2_i32_125 dim 1 : vector<8x128xf32>, i32 -> vector<8x128xf32>
    %453 = arith.addf %452, %45 : vector<8x128xf32>
    %454 = arith.maximumf %446, %451 : vector<8x128xf32>
    %455 = arith.maximumf %454, %453 : vector<8x128xf32>
    %456 = arith.subf %446, %455 : vector<8x128xf32>
    %457 = math.exp %456 : vector<8x128xf32>
    %458 = arith.subf %451, %455 : vector<8x128xf32>
    %459 = math.exp %458 : vector<8x128xf32>
    %460 = arith.addf %457, %459 : vector<8x128xf32>
    %461 = arith.subf %453, %455 : vector<8x128xf32>
    %462 = math.exp %461 : vector<8x128xf32>
    %463 = arith.addf %460, %462 : vector<8x128xf32>
    %464 = math.log %463 : vector<8x128xf32>
    %465 = arith.addf %455, %464 : vector<8x128xf32>
    %466 = arith.addf %465, %449 : vector<8x128xf32>
    %c15_i32_126 = arith.constant 15 : i32
    %c0_127 = arith.constant 0 : index
    %c0_128 = arith.constant 0 : index
    %467 = vector.load %arg3[%c0_127, %c0_128] : memref<8x1xi32, #tpu.memory_space<vmem>>, vector<8x1xi32>
    %c2_i32_129 = arith.constant 2 : i32
    %468 = vector.broadcast %c2_i32_129 : i32 to vector<8x1xi32>
    %469 = arith.muli %468, %467 : vector<8x1xi32>
    %470 = vector.broadcast %469 : vector<8x1xi32> to vector<8x128xi32>
    %471 = arith.cmpi eq, %12, %470 : vector<8x128xi32>
    %c2_i32_130 = arith.constant 2 : i32
    %472 = vector.broadcast %c2_i32_130 : i32 to vector<8x1xi32>
    %473 = arith.muli %472, %467 : vector<8x1xi32>
    %c1_i32_131 = arith.constant 1 : i32
    %474 = vector.broadcast %c1_i32_131 : i32 to vector<8x1xi32>
    %475 = arith.subi %473, %474 : vector<8x1xi32>
    %476 = vector.broadcast %475 : vector<8x1xi32> to vector<8x128xi32>
    %477 = arith.cmpi eq, %12, %476 : vector<8x128xi32>
    %478 = arith.ori %471, %477 : vector<8x128xi1>
    %cst_132 = arith.constant -1.000000e+30 : f32
    %479 = vector.broadcast %cst_132 : f32 to vector<8x128xf32>
    %480 = arith.select %478, %466, %479 : vector<8x128xi1>, vector<8x128xf32>
    %cst_133 = arith.constant dense<0xFF800000> : vector<8xf32>
    %481 = vector.multi_reduction <maximumf>, %480, %cst_133 [1] : vector<8x128xf32> to vector<8xf32>
    %482 = vector.shape_cast %481 : vector<8xf32> to vector<8x1xf32>
    %483 = vector.broadcast %482 : vector<8x1xf32> to vector<8x128xf32>
    %484 = arith.subf %480, %483 : vector<8x128xf32>
    %485 = math.exp %484 : vector<8x128xf32>
    %cst_134 = arith.constant dense<0.000000e+00> : vector<8xf32>
    %486 = vector.multi_reduction <add>, %485, %cst_134 [1] : vector<8x128xf32> to vector<8xf32>
    %487 = vector.shape_cast %486 : vector<8xf32> to vector<8x1xf32>
    %488 = math.log %487 : vector<8x1xf32>
    %489 = arith.addf %482, %488 : vector<8x1xf32>
    %cst_135 = arith.constant 0.000000e+00 : f32
    %490 = vector.broadcast %cst_135 : f32 to vector<8x1xf32>
    %491 = arith.subf %490, %489 : vector<8x1xf32>
    %492 = vector.shape_cast %491 : vector<8x1xf32> to vector<8x1xf32>
    %493 = vector.broadcast %492 : vector<8x1xf32> to vector<8x128xf32>
    %c0_136 = arith.constant 0 : index
    %c0_137 = arith.constant 0 : index
    %494 = vector.load %arg4[%c0_136, %c0_137] : memref<8x128xf32, #tpu.memory_space<vmem>>, vector<8x128xf32>
    tpu.vector_store %arg4[%c0_136, %c0_137], %493 {strides = array<i32>} : memref<8x128xf32, #tpu.memory_space<vmem>>, vector<8x128xf32>,
    return
  }
  func.func @transform_0(%arg0: i32) -> (i32, i32, i32) {
    %c0_i32 = arith.constant 0 : i32
    %c0_i32_0 = arith.constant 0 : i32
    %c0_i32_1 = arith.constant 0 : i32
    return %arg0, %c0_i32, %c0_i32_0 : i32, i32, i32
  }
  func.func @transform_1(%arg0: i32) -> (i32, i32) {
    %c0_i32 = arith.constant 0 : i32
    %c0_i32_0 = arith.constant 0 : i32
    return %arg0, %c0_i32 : i32, i32
  }
  func.func @transform_2(%arg0: i32) -> (i32, i32) {
    %c0_i32 = arith.constant 0 : i32
    %c0_i32_0 = arith.constant 0 : i32
    return %arg0, %c0_i32 : i32, i32
  }
  func.func @transform_3(%arg0: i32) -> (i32, i32) {
    %c0_i32 = arith.constant 0 : i32
    %c0_i32_0 = arith.constant 0 : i32
    return %arg0, %c0_i32 : i32, i32
  }
}

</mosaic_0001>

<bundles_post_ra>
// kernel: tpu_custom_call.1
= control target key start
LH: loop header
LB: loop body
LE: loop exit
PB: predicated region body
PF: predicated region fallthrough
CT: control target
= control target key end

     0   :  { %vm146_vm0 = vcmask 64512   ;;  %v17_v3 = vlaneseq  ;;  %v2178_v6 = vmov 0.0   ;;  %vm2179_vm1 = vmmov 0   ;;  %s2711_s0 = inlined_call_operand.vmem [shape: f32[8,16,8], index: 0, kind: input, shape index: {}]   ;;  %s2712_s1 = inlined_call_operand.vmem [shape: s32[8,6], index: 1, kind: input, shape index: {}]   ;;  %s2713_s2 = inlined_call_operand.vmem [shape: s32[8,1], index: 2, kind: input, shape index: {}]   ;;  %s2714_s3 = inlined_call_operand.hbm [shape: f32[8,128], index: 3, kind: output, shape index: {}]  }
   0x1   :  { %v132_v0 = vld [vmem:[%s2711_s0 + $0x10] sm:$0xff]  ;;  %v2213_v1 = vld [vmem:[%s2711_s0 + $0x20] sm:$0xff]  ;;  %1878 = vmatprep.subr.mxu0 %v2178_v6  ;;  %1880 = vmatprep.mubr.msk.f32.mxu0 %vm2179_vm1, %v2178_v6 }
   0x2   :  { %v130_v2 = vld [vmem:[%s2711_s0] sm:$0xff]  ;;  %v153_v4 = vsel %vm146_vm0, %v132_v0, -inf  ;;  %v2223_v7 = vld [vmem:[%s2711_s0 + $0x30] sm:$0xff]  ;;  %v2226_v8 = vshrl.u32 %v17_v3, 7  ;;  %v159_v9 = vsel %vm146_vm0, %v2213_v1, -inf }
   0x3   :  { %v147_v5 = vsel %vm146_vm0, %v130_v2, -inf  ;;  %1885 = vmatprep.mubr.msk.f32.mxu1 %vm146_vm0, %v130_v2  ;;  %154 = vmax.xlane.f32.xlu0 %v153_v4  ;;  %v165_v10 = vsel %vm146_vm0, %v2223_v7, -inf }
   0x4   :  { %148 = vmax.xlane.f32.xlu1 %v147_v5 }
   0x5   :  { %8 = vsyncpa [#allocation4], 0  ;;  %v2235_v11 = vld [vmem:[%s2711_s0 + $0x40] sm:$0xff]  ;;  %v2237_v12 = vand.u32 127, %v17_v3  ;;  %v21_v13 = vmul.u32 2, %v2226_v8  ;;  %v2246_v15 = vld [vmem:[%s2711_s0 + $0x50] sm:$0xff] }
   0x6   :  { %v15_v14 = vld [vmem:[%s2712_s1] sm:$0xff]  ;;  %v171_v17 = vsel %vm146_vm0, %v2235_v11, -inf  ;;  %vm30_vm2 = vcmask 1045504   ;;  %vm26_vm4 = vcmask 48128   ;;  %v177_v20 = vsel %vm146_vm0, %v2246_v15, -inf  ;;  %v2261_v22 = vld [vmem:[%s2711_s0 + $0x70] sm:$0xff] }
   0x7   :  { %160 = vmax.xlane.f32.xlu0 %v159_v9  ;;  %v22_v16 = vadd.s32 1, %v21_v13  ;;  %v16_v18 = vcvt.s32.f32 %v15_v14  ;;  %v2254_v19 = vld [vmem:[%s2711_s0 + $0x60] sm:$0xff]  ;;  %v189_v24 = vsel %vm146_vm0, %v2261_v22, -inf  ;;  %v2180_v14 = vmov 1966171168   ;;  %s2181_s29 = smov 2  }
   0x8   :  { %166 = vmax.xlane.f32.xlu1 %v165_v10  ;;  %v183_v23 = vsel %vm146_vm0, %v2254_v19, -inf  ;;  %vm117_vm6 = vcmp.lt.s32.totalorder %v2237_v12, 12  ;;  %vm1213_vm1 = vcmask 1041409  }
   0x9   :  { %vm23_vm3 = vcmp.eq.s32.totalorder %v2237_v12, %v22_v16  ;;  %v389_v16 = vunpack.c.l.s4 %v2180_v14 }
   0xa   :  { %v1816_v21 = vsel %vm23_vm3, 1.0, %v2178_v6  ;;  %vm1219_vm3 = vcmask 1043459  }
   0xb   :  { %172 = vmax.xlane.f32.xlu0 %v171_v17  ;;  %1879 = vmatpush3.msk.msra.mxu0 %vm30_vm2, %v1816_v21  ;;  %v108_v17 = vand.u32 1, %v2237_v12  ;;  %vm1216_vm2 = vcmask 1042434  }
   0xc   :  { %1881 = vmatmul.mubr.msk.f32.vlgmr.msra.gmra.mxu0 %vm26_vm4, %v16_v18  ;;  %178 = vmax.xlane.f32.xlu1 %v177_v20  ;;  %v390_v18 = vunpack.c.0.s8 %v389_v16  ;;  %vm1222_vm4 = vcmask 1044484  }
   0xd   :  { %1890 = vmatprep.mubr.msk.f32.mxu0 %vm146_vm0, %v132_v0  ;;  %vm2307_vm5 = vcmp.eq.s32.totalorder %v108_v17, 1 }
   0xe   :  { %vm118_vm7 = vmand %vm2307_vm5, %vm117_vm6  ;;  %vm1225_vm6 = vcmask 1045509  }
   0xf   :  { %184 = vmax.xlane.f32.xlu0 %v183_v23 }
  0x10   :  { %190 = vmax.xlane.f32.xlu1 %v189_v24  ;;  %v393_v24 = vsub.s32 %v390_v18, %v2226_v8 }
  0x8c   :  { %v155_v25 = vpop.xlane.xlu0 %154 }
  0x8d   :  { %v149_v26 = vpop.xlane.xlu1 %148  ;;  %v2268_v27 = vmax.f32 %v155_v25, -1e+30 }
  0x8e   :  { %v2270_v28 = vmax.f32 %v149_v26, -1e+30 }
  0x8f   :  { %v213_v29 = vsub.f32 %v132_v0, %v2268_v27 }
  0x90   :  { %v211_v30 = vsub.f32 %v130_v2, %v2270_v28  ;;  %v161_v31 = vpop.xlane.xlu0 %160 }
  0x91   :  { %v167_v32 = vpop.xlane.xlu1 %166  ;;  %v231_v33 = vmul.f32 1.442695, %v213_v29  ;;  %v2274_v34 = vmax.f32 %v161_v31, -1e+30 }
  0x92   :  { %v227_v35 = vmul.f32 1.442695, %v211_v30  ;;  %v2276_v36 = vmax.f32 %v167_v32, -1e+30  ;;  %v438_v32 = vsub.s32 0, %v2226_v8 }
  0x93   :  { %1936 = vpow2.f32 %v231_v33  ;;  %v215_v37 = vsub.f32 %v2213_v1, %v2274_v34 }
  0x94   :  { %1938 = vpow2.f32 %v227_v35  ;;  %v173_v38 = vpop.xlane.xlu0 %172  ;;  %v217_v39 = vsub.f32 %v2223_v7, %v2276_v36 }
  0x95   :  { %v235_v40 = vmul.f32 1.442695, %v215_v37  ;;  %v2282_v41 = vmax.f32 %v173_v38, -1e+30  ;;  %v179_v42 = vpop.xlane.xlu1 %178 }
  0x96   :  { %v239_v43 = vmul.f32 1.442695, %v217_v39  ;;  %v2284_v44 = vmax.f32 %v179_v42, -1e+30 }
  0x97   :  { %1940 = vpow2.f32 %v235_v40  ;;  %v219_v45 = vsub.f32 %v2235_v11, %v2282_v41 }
  0x98   :  { %1942 = vpow2.f32 %v239_v43  ;;  %v185_v46 = vpop.xlane.xlu0 %184  ;;  %v221_v47 = vsub.f32 %v2246_v15, %v2284_v44 }
  0x99   :  { %v243_v48 = vmul.f32 1.442695, %v219_v45  ;;  %v2290_v49 = vmax.f32 %v185_v46, -1e+30  ;;  %v191_v50 = vpop.xlane.xlu1 %190  ;;  %v2327_v45 = vld [vmem:[%s2711_s0 + $0x8] sm:$0xff] }
  0x9a   :  { %v247_v51 = vmul.f32 1.442695, %v221_v47  ;;  %v2292_v52 = vmax.f32 %v191_v50, -1e+30  ;;  %v2182_v50 = vmov 1.0  }
  0x9b   :  { %1944 = vpow2.f32 %v243_v48  ;;  %v223_v53 = vsub.f32 %v2254_v19, %v2290_v49 }
  0x9c   :  { %1946 = vpow2.f32 %v247_v51  ;;  %v225_v54 = vsub.f32 %v2261_v22, %v2292_v52  ;;  %v273_v14 = vsub.f32 -1e+30, %v2292_v52 }
  0x9d   :  { %v251_v55 = vmul.f32 1.442695, %v223_v53 }
  0x9e   :  { %v255_v56 = vmul.f32 1.442695, %v225_v54  ;;  %v303_v18 = vmul.f32 1.442695, %v273_v14 }
  0x9f   :  { %1948 = vpow2.f32 %v251_v55  ;;  %v2334_v55 = vld [vmem:[%s2711_s0 + $0x18] sm:$0xff] }
  0xa0   :  { %v1937_v57 = vpop.eup %1936  ;;  %1950 = vpow2.f32 %v255_v56 }
  0xa1   :  { %v1939_v58 = vpop.eup %1938  ;;  %v329_v59 = vsel %vm146_vm0, %v1937_v57, 0.0 }
  0xa2   :  { %330 = vadd.xlane.f32.xlu0 %v329_v59  ;;  %v323_v60 = vsel %vm146_vm0, %v1939_v58, 0.0  ;;  %v2345_v59 = vld [vmem:[%s2711_s0 + $0x28] sm:$0xff] }
  0xa4   :  { %v1941_v61 = vpop.eup %1940 }
  0xa5   :  { %v1943_v62 = vpop.eup %1942  ;;  %v335_v63 = vsel %vm146_vm0, %v1941_v61, 0.0  ;;  %v2353_v61 = vld [vmem:[%s2711_s0 + $0x38] sm:$0xff] }
  0xa6   :  { %336 = vadd.xlane.f32.xlu1 %v335_v63  ;;  %324 = vadd.xlane.f32.xlu0 %v323_v60  ;;  %v341_v0 = vsel %vm146_vm0, %v1943_v62, 0.0  ;;  %v2382_v63 = vld [vmem:[%s2711_s0 + $0x68] sm:$0xff] }
  0xa8   :  { %v1945_v2 = vpop.eup %1944 }
  0xa9   :  { %v1947_v3 = vpop.eup %1946  ;;  %v347_v4 = vsel %vm146_vm0, %v1945_v2, 0.0 }
  0xaa   :  { %348 = vadd.xlane.f32.xlu0 %v347_v4  ;;  %342 = vadd.xlane.f32.xlu1 %v341_v0  ;;  %v353_v5 = vsel %vm146_vm0, %v1947_v3, 0.0  ;;  %v263_v0 = vsub.f32 -1e+30, %v2274_v34  ;;  %v267_v4 = vsub.f32 -1e+30, %v2282_v41 }
  0xac   :  { %v1949_v6 = vpop.eup %1948  ;;  %v283_v3 = vmul.f32 1.442695, %v263_v0 }
  0xad   :  { %v1951_v9 = vpop.eup %1950  ;;  %v359_v10 = vsel %vm146_vm0, %v1949_v6, 0.0 }
  0xae   :  { %360 = vadd.xlane.f32.xlu0 %v359_v10  ;;  %354 = vadd.xlane.f32.xlu1 %v353_v5  ;;  %v365_v13 = vsel %vm146_vm0, %v1951_v9, 0.0  ;;  %v269_v5 = vsub.f32 -1e+30, %v2284_v44  ;;  %v271_v9 = vsub.f32 -1e+30, %v2290_v49 }
  0xaf   :  { %v291_v10 = vmul.f32 1.442695, %v267_v4 }
  0xb0   :  { %v299_v16 = vmul.f32 1.442695, %v271_v9 }
  0xb2   :  { %366 = vadd.xlane.f32.xlu1 %v365_v13  ;;  %v295_v13 = vmul.f32 1.442695, %v269_v5 }
  0xcc   :  { %v100_v21 = vpop.f32.mrf.mxu0 }
  0xcd   :  { %v1923_v23 = vtrunc.f32 %v100_v21 }
  0xce   :  { %v1882_v25 = vpop.f32.mrf.mxu0 }
  0xcf   :  { %v1924_v26 = vcvt.f32.s32 %v1923_v23 }
  0xd1   :  { %v2315_v29 = vsel %vm118_vm7, %v1924_v26, 0  ;;  %vm1228_vm7 = vcmask 1046534  }
  0xd2   :  { %v387_v30 = vcombine.high %v2315_v29, %v2315_v29  ;;  %121 = vrot.lane.b32.xlu0 %v2315_v29, %s2181_s29  ;;  %v394_v31 = vrot.slane %v2315_v29, %v393_v24 }
  0xd4   :  { %v401_v33 = vrot.slane %v387_v30, %v393_v24  ;;  %v402_v35 = vcombine.high %v394_v31, %v394_v31  ;;  %v410_v37 = vrot.slane %v394_v31, %v393_v24 }
  0xd6   :  { %v432_v38 = vcombine.high %v410_v37, %v410_v37  ;;  %v439_v39 = vrot.slane %v410_v37, %v438_v32  ;;  %v424_v40 = vrot.slane %v402_v35, %v393_v24  ;;  %v417_v42 = vrot.slane %v401_v33, %v393_v24 }
  0xd7   :  { %v403_v43 = vcombine.high %v401_v33, %v401_v33 }
  0xd8   :  { %vm468_vm8 = vcmp.eq.s32.totalorder %v2226_v8, %v439_v39  ;;  %v443_v46 = vrot.slane %v424_v40, %v438_v32  ;;  %v447_v47 = vrot.slane %v432_v38, %v438_v32  ;;  %v434_v48 = vcombine.high %v424_v40, %v424_v40 }
  0xd9   :  { %1883 = vmatprep.subr.msk.mxu1 %vm468_vm8, %v2182_v50  ;;  %v455_v51 = vrot.slane %v417_v42, %v438_v32  ;;  %v431_v53 = vrot.slane %v403_v43, %v393_v24  ;;  %v433_v54 = vcombine.high %v417_v42, %v417_v42 }
  0xda   :  { %1884 = vmatpush3.msk.msra.mxu1 %vm468_vm8, %v2182_v50  ;;  %vm469_vm9 = vcmp.eq.s32.totalorder %v2226_v8, %v443_v46  ;;  %vm470_vm10 = vcmp.eq.s32.totalorder %v2226_v8, %v447_v47  ;;  %v451_v56 = vrot.slane %v434_v48, %v438_v32  ;;  %vm1231_vm8 = vcmask 1047559  }
  0xdb   :  { %1886 = vmatmul.mubr.msk.f32.vlgmr.msra.gmra.mxu1 %vm146_vm0, %v2327_v45  ;;  %1888 = vmatprep.subr.msk.mxu0 %vm469_vm9, %v2182_v50  ;;  %v459_v57 = vrot.slane %v431_v53, %v438_v32  ;;  %v435_v58 = vcombine.high %v431_v53, %v431_v53  ;;  %vm472_vm12 = vcmp.eq.s32.totalorder %v2226_v8, %v455_v51 }
  0xdc   :  { %1893 = vmatprep.subr.msk.mxu1 %vm470_vm10, %v2182_v50  ;;  %1889 = vmatpush3.msk.msra.mxu0 %vm469_vm9, %v2182_v50  ;;  %vm471_vm11 = vcmp.eq.s32.totalorder %v2226_v8, %v451_v56  ;;  %v463_v60 = vrot.slane %v433_v54, %v438_v32  ;;  %vm1414_vm9 = vcmp.lt.s32.totalorder %v2237_v12, 2 }
  0xdd   :  { %1894 = vmatpush3.msk.msra.mxu1 %vm470_vm10, %v2182_v50  ;;  %1891 = vmatmul.mubr.msk.f32.vlgmr.msra.gmra.mxu0 %vm146_vm0, %v2334_v55  ;;  %vm473_vm13 = vcmp.eq.s32.totalorder %v2226_v8, %v459_v57  ;;  %v467_v62 = vrot.slane %v435_v58, %v438_v32  ;;  %vm123_vm10 = vcmp.ge.s32.totalorder %v2237_v12, 3 }
  0xde   :  { %1898 = vmatprep.subr.msk.mxu0 %vm471_vm11, %v2182_v50  ;;  %1903 = vmatprep.subr.msk.mxu1 %vm472_vm12, %v2182_v50  ;;  %vm474_vm14 = vcmp.eq.s32.totalorder %v2226_v8, %v463_v60 }
  0xdf   :  { %1895 = vmatprep.mubr.msk.f32.mxu1 %vm146_vm0, %v2213_v1  ;;  %1899 = vmatpush3.msk.msra.mxu0 %vm471_vm11, %v2182_v50  ;;  %v2363_v1 = vld [vmem:[%s2711_s0 + $0x48] sm:$0xff]  ;;  %vm475_vm15 = vcmp.eq.s32.totalorder %v2226_v8, %v467_v62  ;;  %v2393_v8 = vld [vmem:[%s2711_s0 + $0x78] sm:$0xff]  ;;  %vm128_vm11 = vcmp.ge.s32.totalorder %v2237_v12, 1 }
  0xe0   :  { %1896 = vmatmul.mubr.msk.f32.vlgmr.msra.gmra.mxu1 %vm146_vm0, %v2345_v59  ;;  %1908 = vmatprep.subr.msk.mxu0 %vm473_vm13, %v2182_v50 }
  0xe1   :  { %1904 = vmatpush3.msk.msra.mxu1 %vm472_vm12, %v2182_v50  ;;  %1900 = vmatprep.mubr.msk.f32.mxu0 %vm146_vm0, %v2223_v7  ;;  %v2373_v7 = vld [vmem:[%s2711_s0 + $0x58] sm:$0xff]  ;;  %s2183_s0 = smov 1   ;;  %vm124_vm12 = vmand %vm2307_vm5, %vm123_vm10 }
  0xe2   :  { %1913 = vmatprep.subr.msk.mxu1 %vm474_vm14, %v2182_v50  ;;  %1901 = vmatmul.mubr.msk.f32.vlgmr.msra.gmra.mxu0 %vm146_vm0, %v2353_v61 }
  0xe3   :  { %1909 = vmatpush3.msk.msra.mxu0 %vm473_vm13, %v2182_v50  ;;  %1905 = vmatprep.mubr.msk.f32.mxu1 %vm146_vm0, %v2235_v11  ;;  %v259_v11 = vsub.f32 -1e+30, %v2270_v28 }
  0xe4   :  { %1918 = vmatprep.subr.msk.mxu0 %vm475_vm15, %v2182_v50  ;;  %1906 = vmatmul.mubr.msk.f32.vlgmr.msra.gmra.mxu1 %vm146_vm0, %v2363_v1 }
  0xe5   :  { %1914 = vmatpush3.msk.msra.mxu1 %vm474_vm14, %v2182_v50  ;;  %1910 = vmatprep.mubr.msk.f32.mxu0 %vm146_vm0, %v2246_v15  ;;  %v261_v15 = vsub.f32 -1e+30, %v2268_v27 }
  0xe6   :  { %1911 = vmatmul.mubr.msk.f32.vlgmr.msra.gmra.mxu0 %vm146_vm0, %v2373_v7  ;;  %1915 = vmatprep.mubr.msk.f32.mxu1 %vm146_vm0, %v2254_v19  ;;  %v275_v19 = vmul.f32 1.442695, %v259_v11 }
  0xe7   :  { %1919 = vmatpush3.msk.msra.mxu0 %vm475_vm15, %v2182_v50  ;;  %1920 = vmatprep.mubr.msk.f32.mxu0 %vm146_vm0, %v2261_v22  ;;  %v279_v2 = vmul.f32 1.442695, %v261_v15  ;;  %v265_v22 = vsub.f32 -1e+30, %v2276_v36 }
  0xe8   :  { %1916 = vmatmul.mubr.msk.f32.vlgmr.msra.gmra.mxu1 %vm146_vm0, %v2382_v63  ;;  %1952 = vpow2.f32 %v275_v19 }
  0xe9   :  { %1954 = vpow2.f32 %v279_v2  ;;  %v287_v6 = vmul.f32 1.442695, %v265_v22 }
  0xea   :  { %1921 = vmatmul.mubr.msk.f32.vlgmr.msra.gmra.mxu0 %vm146_vm0, %v2393_v8  ;;  %1956 = vpow2.f32 %v283_v3 }
  0xeb   :  { %1958 = vpow2.f32 %v287_v6 }
  0xec   :  { %1960 = vpow2.f32 %v291_v10 }
  0xed   :  { %1962 = vpow2.f32 %v295_v13 }
  0xee   :  { %1964 = vpow2.f32 %v299_v16 }
  0xef   :  { %1966 = vpow2.f32 %v303_v18 }
  0xf5   :  { %v1953_v23 = vpop.eup %1952 }
  0xf6   :  { %v1955_v25 = vpop.eup %1954  ;;  %v307_v26 = vmul.f32 0.0, %v1953_v23 }
  0xf7   :  { %v1957_v31 = vpop.eup %1956  ;;  %v309_v32 = vmul.f32 0.0, %v1955_v25 }
  0xf8   :  { %v1959_v35 = vpop.eup %1958  ;;  %v311_v39 = vmul.f32 0.0, %v1957_v31 }
  0xf9   :  { %v1961_v40 = vpop.eup %1960  ;;  %v313_v46 = vmul.f32 0.0, %v1959_v35 }
  0xfa   :  { %v1963_v42 = vpop.eup %1962  ;;  %v315_v50 = vmul.f32 0.0, %v1961_v40 }
  0xfb   :  { %v1965_v48 = vpop.eup %1964  ;;  %v317_v54 = vmul.f32 0.0, %v1963_v42 }
  0xfc   :  { %v1967_v56 = vpop.eup %1966  ;;  %v319_v58 = vmul.f32 0.0, %v1965_v48 }
  0xfd   :  { %v321_v15 = vmul.f32 0.0, %v1967_v56 }
 0x12b   :  { %v331_v17 = vpop.xlane.xlu0 %330 }
 0x12c   :  { %v373_v37 = vadd.f32 %v331_v17, %v309_v32 }
 0x12f   :  { %v337_v21 = vpop.xlane.xlu1 %336  ;;  %v325_v24 = vpop.xlane.xlu0 %324 }
 0x130   :  { %v371_v33 = vadd.f32 %v325_v24, %v307_v26  ;;  %v375_v43 = vadd.f32 %v337_v21, %v311_v39 }
 0x132   :  { %1968 = vlog2.f32 %v371_v33 }
 0x133   :  { %v343_v30 = vpop.xlane.xlu1 %342  ;;  %v349_v38 = vpop.xlane.xlu0 %348  ;;  %1970 = vlog2.f32 %v373_v37 }
 0x134   :  { %v377_v51 = vadd.f32 %v343_v30, %v313_v46  ;;  %1972 = vlog2.f32 %v375_v43  ;;  %v379_v57 = vadd.f32 %v349_v38, %v315_v50 }
 0x136   :  { %1974 = vlog2.f32 %v377_v51 }
 0x137   :  { %v355_v47 = vpop.xlane.xlu1 %354  ;;  %v361_v53 = vpop.xlane.xlu0 %360  ;;  %1976 = vlog2.f32 %v379_v57 }
 0x138   :  { %v381_v60 = vadd.f32 %v355_v47, %v317_v54  ;;  %v383_v62 = vadd.f32 %v361_v53, %v319_v58 }
 0x13a   :  { %1978 = vlog2.f32 %v381_v60 }
 0x13b   :  { %v367_v11 = vpop.xlane.xlu1 %366  ;;  %1980 = vlog2.f32 %v383_v62 }
 0x13c   :  { %v385_v19 = vadd.f32 %v367_v11, %v321_v15 }
 0x13e   :  { %1982 = vlog2.f32 %v385_v19 }
 0x13f   :  { %v1969_v0 = vpop.eup %1968 }
 0x140   :  { %v1971_v2 = vpop.eup %1970  ;;  %v1141_v22 = vmul.f32 0.6931472, %v1969_v0 }
 0x141   :  { %v1973_v3 = vpop.eup %1972  ;;  %v1145_v4 = vmul.f32 0.6931472, %v1971_v2 }
 0x142   :  { %v1172_v9 = vadd.f32 %v1141_v22, %v2270_v28  ;;  %v1149_v14 = vmul.f32 0.6931472, %v1973_v3 }
 0x143   :  { %v1975_v6 = vpop.eup %1974  ;;  %v1174_v18 = vadd.f32 %v1145_v4, %v2268_v27 }
 0x144   :  { %v1977_v16 = vpop.eup %1976  ;;  %v1153_v24 = vmul.f32 0.6931472, %v1975_v6  ;;  %v1176_v28 = vadd.f32 %v1149_v14, %v2274_v34 }
 0x145   :  { %v1157_v33 = vmul.f32 0.6931472, %v1977_v16 }
 0x146   :  { %v1178_v39 = vadd.f32 %v1153_v24, %v2276_v36 }
 0x147   :  { %v1979_v21 = vpop.eup %1978  ;;  %v1180_v57 = vadd.f32 %v1157_v33, %v2282_v41 }
 0x148   :  { %v1981_v25 = vpop.eup %1980  ;;  %v1161_v35 = vmul.f32 0.6931472, %v1979_v21 }
 0x149   :  { %v1165_v40 = vmul.f32 0.6931472, %v1981_v25 }
 0x14a   :  { %v1182_v60 = vadd.f32 %v1161_v35, %v2284_v44 }
 0x14b   :  { %v1983_v37 = vpop.eup %1982 }
 0x14c   :  { %v1169_v62 = vmul.f32 0.6931472, %v1983_v37 }
 0x19b   :  { %v2407_v5 = vpop.f32.mrf.mxu1 }
 0x19d   :  { %v564_v10 = vpop.f32.mrf.mxu1  ;;  %v2410_v13 = vpop.f32.mrf.mxu0 }
 0x19e   :  { %v1188_v17 = vsub.f32 %v564_v10, %v1172_v9  ;;  %v1184_v10 = vadd.f32 %v1165_v40, %v2290_v49 }
 0x19f   :  { %v645_v23 = vpop.f32.mrf.mxu0 }
 0x1a0   :  { %1310 = vst [vmem:[#allocation2 + $0x31] sm:$0x80] %v1188_v17  ;;  %v1190_v26 = vsub.f32 %v645_v23, %v1174_v18  ;;  %v2413_v30 = vpop.f32.mrf.mxu1 }
 0x1a2   :  { %v1212_v31 = vrot.slane %v1190_v26, 7  ;;  %v726_v32 = vpop.f32.mrf.mxu1  ;;  %v2416_v27 = vpop.f32.mrf.mxu0 }
 0x1a3   :  { %v1192_v38 = vsub.f32 %v726_v32, %v1176_v28  ;;  %v1186_v32 = vadd.f32 %v1169_v62, %v2292_v52 }
 0x1a4   :  { %v1214_v42 = vsel %vm1213_vm1, %v1212_v31, %v1188_v17  ;;  %v1235_v43 = vsel %vm1216_vm2, %v1212_v31, %v1188_v17  ;;  %v1246_v46 = vsel %vm1219_vm3, %v1212_v31, %v1188_v17  ;;  %v1257_v34 = vsel %vm1222_vm4, %v1212_v31, %v1188_v17  ;;  %v807_v47 = vpop.f32.mrf.mxu0  ;;  %v2423_v48 = vpop.f32.mrf.mxu1 }
 0x1a5   :  { %v1268_v50 = vsel %vm1225_vm6, %v1212_v31, %v1188_v17  ;;  %v1279_v51 = vsel %vm1228_vm7, %v1212_v31, %v1188_v17  ;;  %v1290_v53 = vsel %vm1231_vm8, %v1212_v31, %v1188_v17  ;;  %v1215_v54 = vrot.slane %v1192_v38, 6 }
 0x1a6   :  { %1299 = vst [vmem:[#allocation2 + $0x2a] sm:$0xc0] %v1290_v53  ;;  %v1194_v36 = vsub.f32 %v807_v47, %v1178_v39  ;;  %v888_v56 = vpop.f32.mrf.mxu1  ;;  %v2429_v58 = vpop.f32.mrf.mxu0 }
 0x1a7   :  { %v1217_v11 = vsel %vm1216_vm2, %v1215_v54, %v1214_v42  ;;  %v1236_v15 = vsel %vm1219_vm3, %v1215_v54, %v1235_v43  ;;  %v1247_v19 = vsel %vm1222_vm4, %v1215_v54, %v1246_v46  ;;  %v1258_v0 = vsel %vm1225_vm6, %v1215_v54, %v1257_v34 }
 0x1a8   :  { %v1269_v2 = vsel %vm1228_vm7, %v1215_v54, %v1268_v50  ;;  %v1280_v22 = vsel %vm1231_vm8, %v1215_v54, %v1279_v51  ;;  %v1301_v3 = vsel %vm1213_vm1, %v1215_v54, %v1212_v31  ;;  %v1218_v41 = vrot.slane %v1194_v36, 5  ;;  %v969_v4 = vpop.f32.mrf.mxu0  ;;  %v2439_v6 = vpop.f32.mrf.mxu1 }
 0x1a9   :  { %1288 = vst [vmem:[#allocation2 + $0x23] sm:$0xe0] %v1280_v22  ;;  %v1196_v44 = vsub.f32 %v888_v56, %v1180_v57  ;;  %v1198_v9 = vsub.f32 %v969_v4, %v1182_v60 }
 0x1aa   :  { %v1220_v14 = vsel %vm1219_vm3, %v1218_v41, %v1217_v11  ;;  %v1237_v16 = vsel %vm1222_vm4, %v1218_v41, %v1236_v15  ;;  %v1248_v17 = vsel %vm1225_vm6, %v1218_v41, %v1247_v19  ;;  %v1259_v18 = vsel %vm1228_vm7, %v1218_v41, %v1258_v0  ;;  %v1050_v21 = vpop.f32.mrf.mxu1  ;;  %v2446_v23 = vpop.f32.mrf.mxu0 }
 0x1ab   :  { %v1270_v24 = vsel %vm1231_vm8, %v1218_v41, %v1269_v2  ;;  %v1291_v25 = vsel %vm1213_vm1, %v1218_v41, %v1215_v54  ;;  %v1302_v26 = vsel %vm1216_vm2, %v1218_v41, %v1301_v3  ;;  %v1221_v28 = vrot.slane %v1196_v44, 4 }
 0x1ac   :  { %1277 = vst [vmem:[#allocation2 + $0x1c] sm:$0xf0] %v1270_v24  ;;  %v1224_v49 = vrot.slane %v1198_v9, 3  ;;  %v1200_v31 = vsub.f32 %v1050_v21, %v1184_v10  ;;  %v1131_v39 = vpop.f32.mrf.mxu0 }
 0x1ad   :  { %v1223_v33 = vsel %vm1222_vm4, %v1221_v28, %v1220_v14  ;;  %v1238_v35 = vsel %vm1225_vm6, %v1221_v28, %v1237_v16  ;;  %v1249_v37 = vsel %vm1228_vm7, %v1221_v28, %v1248_v17  ;;  %v1260_v38 = vsel %vm1231_vm8, %v1221_v28, %v1259_v18  ;;  %v122_v14 = vpop.permute.xlu0 %121 }
 0x1ae   :  { %1266 = vst [vmem:[#allocation2 + $0x15] sm:$0xf8] %v1260_v38  ;;  %v1281_v40 = vsel %vm1213_vm1, %v1221_v28, %v1218_v41  ;;  %v1292_v42 = vsel %vm1216_vm2, %v1221_v28, %v1291_v25  ;;  %v1303_v43 = vsel %vm1219_vm3, %v1221_v28, %v1302_v26  ;;  %v1226_v46 = vsel %vm1225_vm6, %v1224_v49, %v1223_v33 }
 0x1af   :  { %v1239_v52 = vsel %vm1228_vm7, %v1224_v49, %v1238_v35  ;;  %v1250_v34 = vsel %vm1231_vm8, %v1224_v49, %v1249_v37  ;;  %v1271_v47 = vsel %vm1213_vm1, %v1224_v49, %v1221_v28  ;;  %v1282_v50 = vsel %vm1216_vm2, %v1224_v49, %v1281_v40 }
 0x1b0   :  { %1255 = vst [vmem:[#allocation2 + $0xe] sm:$0xfc] %v1250_v34  ;;  %v1293_v51 = vsel %vm1219_vm3, %v1224_v49, %v1292_v42  ;;  %v1304_v53 = vsel %vm1222_vm4, %v1224_v49, %v1303_v43  ;;  %v1227_v54 = vrot.slane %v1200_v31, 2  ;;  %v1202_v36 = vsub.f32 %v1131_v39, %v1186_v32 }
 0x1b1   :  { %v2184_v16 = vmov -1e+30   ;;  %vm125_vm13 = vcmp.ne.s32.totalorder %v2315_v29, %v122_v14 }
 0x1b2   :  { %v1229_v56 = vsel %vm1228_vm7, %v1227_v54, %v1226_v46  ;;  %v1240_v57 = vsel %vm1231_vm8, %v1227_v54, %v1239_v52  ;;  %v1261_v60 = vsel %vm1213_vm1, %v1227_v54, %v1224_v49  ;;  %v1272_v62 = vsel %vm1216_vm2, %v1227_v54, %v1271_v47  ;;  %vm126_vm14 = vmand %vm124_vm12, %vm125_vm13 }
 0x1b3   :  { %1244 = vst [vmem:[#allocation2 + $0x7] sm:$0xfe] %v1240_v57  ;;  %v1283_v11 = vsel %vm1219_vm3, %v1227_v54, %v1282_v50  ;;  %v1294_v15 = vsel %vm1222_vm4, %v1227_v54, %v1293_v51  ;;  %v1305_v19 = vsel %vm1225_vm6, %v1227_v54, %v1304_v53  ;;  %v1230_v0 = vrot.slane %v1202_v36, 1 }
 0x1b4   :  { %v2489_v17 = vsel %vm128_vm11, 0.0, %v2184_v16  ;;  %v2493_v24 = vsel %vm126_vm14, 0.0, %v2184_v16 }
 0x1b5   :  { %v1232_v2 = vsel %vm1231_vm8, %v1230_v0, %v1229_v56  ;;  %1245 = vst [vmem:[#allocation2 + $0xf] sm:$0x1] %v1230_v0  ;;  %v1251_v22 = vsel %vm1213_vm1, %v1230_v0, %v1227_v54  ;;  %v1262_v3 = vsel %vm1216_vm2, %v1230_v0, %v1261_v60  ;;  %v1273_v41 = vsel %vm1219_vm3, %v1230_v0, %v1272_v62 }
 0x1b6   :  { %1256 = vst [vmem:[#allocation2 + $0x16] sm:$0x3] %v1251_v22  ;;  %1267 = vst [vmem:[#allocation2 + $0x1d] sm:$0x7] %v1262_v3  ;;  %v1284_v4 = vsel %vm1222_vm4, %v1230_v0, %v1283_v11  ;;  %v1295_v44 = vsel %vm1225_vm6, %v1230_v0, %v1294_v15  ;;  %v1306_v9 = vsel %vm1228_vm7, %v1230_v0, %v1305_v19  ;;  %v1416_v10 = vsel %vm1414_vm9, %v1232_v2, -1e+30 }
 0x1b7   :  { %1278 = vst [vmem:[#allocation2 + $0x24] sm:$0xf] %v1273_v41  ;;  %1289 = vst [vmem:[#allocation2 + $0x2b] sm:$0x1f] %v1284_v4  ;;  %1418 = vrot.lane.b32.xlu1 %v1416_v10, %s2183_s0 }
 0x1b8   :  { %1300 = vst [vmem:[#allocation2 + $0x32] sm:$0x3f] %v1295_v44  ;;  %1311 = vst [vmem:[#allocation2 + $0x39] sm:$0x7f] %v1306_v9 }
 0x1bb   :  { %1421 = vrot.lane.b32.xlu1 %v1416_v10, %s2181_s29 }
 0x1bc   :  { %v1417_v34 = vld [vmem:[#allocation2 + $0x8] sm:$0xff] }
 0x229   :  { %v1419_v18 = vpop.permute.xlu1 %1418 }
 0x22a   :  { %v1420_v21 = vadd.f32 %v1419_v18, %v2489_v17 }
 0x22c   :  { %v1424_v26 = vmax.f32 %v1416_v10, %v1420_v21 }
 0x22d   :  { %v1422_v25 = vpop.permute.xlu1 %1421 }
 0x22e   :  { %v1423_v28 = vadd.f32 %v1422_v25, %v2493_v24 }
 0x230   :  { %v1425_v49 = vmax.f32 %v1424_v26, %v1423_v28 }
 0x232   :  { %v1426_v31 = vsub.f32 %v1416_v10, %v1425_v49  ;;  %v1429_v32 = vsub.f32 %v1420_v21, %v1425_v49  ;;  %v1433_v20 = vsub.f32 %v1423_v28, %v1425_v49  ;;  %v1441_v10 = vld [vmem:[#allocation2 + $0x10] sm:$0xff] }
 0x234   :  { %v1427_v33 = vmul.f32 1.442695, %v1426_v31  ;;  %v1430_v35 = vmul.f32 1.442695, %v1429_v32  ;;  %v1434_v37 = vmul.f32 1.442695, %v1433_v20 }
 0x236   :  { %1984 = vpow2.f32 %v1427_v33 }
 0x237   :  { %1986 = vpow2.f32 %v1430_v35 }
 0x238   :  { %1988 = vpow2.f32 %v1434_v37 }
 0x243   :  { %v1985_v29 = vpop.eup %1984 }
 0x244   :  { %v1987_v38 = vpop.eup %1986 }
 0x245   :  { %v1432_v39 = vadd.f32 %v1987_v38, %v1985_v29  ;;  %v1989_v40 = vpop.eup %1988 }
 0x247   :  { %v1436_v42 = vadd.f32 %v1989_v40, %v1432_v39 }
 0x249   :  { %1990 = vlog2.f32 %v1436_v42 }
 0x256   :  { %v1991_v43 = vpop.eup %1990 }
 0x257   :  { %v1438_v46 = vmul.f32 0.6931472, %v1991_v43 }
 0x259   :  { %v1439_v52 = vadd.f32 %v1438_v46, %v1425_v49 }
 0x25b   :  { %v1440_v47 = vadd.f32 %v1439_v52, %v1417_v34  ;;  %v1465_v52 = vld [vmem:[#allocation2 + $0x18] sm:$0xff] }
 0x25d   :  { %1445 = vrot.lane.b32.xlu0 %v1440_v47, %s2181_s29  ;;  %1442 = vrot.lane.b32.xlu1 %v1440_v47, %s2183_s0 }
 0x2cf   :  { %v1446_v50 = vpop.permute.xlu0 %1445  ;;  %v1443_v51 = vpop.permute.xlu1 %1442 }
 0x2d0   :  { %v1444_v53 = vadd.f32 %v1443_v51, %v2489_v17  ;;  %v1447_v54 = vadd.f32 %v1446_v50, %v2493_v24 }
 0x2d2   :  { %v1448_v36 = vmax.f32 %v1440_v47, %v1444_v53 }
 0x2d4   :  { %v1449_v56 = vmax.f32 %v1448_v36, %v1447_v54 }
 0x2d6   :  { %v1450_v57 = vsub.f32 %v1440_v47, %v1449_v56  ;;  %v1453_v60 = vsub.f32 %v1444_v53, %v1449_v56  ;;  %v1457_v62 = vsub.f32 %v1447_v54, %v1449_v56 }
 0x2d8   :  { %v1451_v11 = vmul.f32 1.442695, %v1450_v57  ;;  %v1454_v15 = vmul.f32 1.442695, %v1453_v60  ;;  %v1458_v19 = vmul.f32 1.442695, %v1457_v62 }
 0x2da   :  { %1992 = vpow2.f32 %v1451_v11 }
 0x2db   :  { %1994 = vpow2.f32 %v1454_v15 }
 0x2dc   :  { %1996 = vpow2.f32 %v1458_v19 }
 0x2e7   :  { %v1993_v0 = vpop.eup %1992 }
 0x2e8   :  { %v1995_v2 = vpop.eup %1994 }
 0x2e9   :  { %v1456_v22 = vadd.f32 %v1995_v2, %v1993_v0  ;;  %v1997_v3 = vpop.eup %1996 }
 0x2eb   :  { %v1460_v41 = vadd.f32 %v1997_v3, %v1456_v22 }
 0x2ed   :  { %1998 = vlog2.f32 %v1460_v41 }
 0x2fa   :  { %v1999_v4 = vpop.eup %1998 }
 0x2fb   :  { %v1462_v44 = vmul.f32 0.6931472, %v1999_v4 }
 0x2fd   :  { %v1463_v9 = vadd.f32 %v1462_v44, %v1449_v56 }
 0x2ff   :  { %v1464_v14 = vadd.f32 %v1463_v9, %v1441_v10  ;;  %v1489_v9 = vld [vmem:[#allocation2 + $0x20] sm:$0xff] }
 0x301   :  { %1469 = vrot.lane.b32.xlu0 %v1464_v14, %s2181_s29  ;;  %1466 = vrot.lane.b32.xlu1 %v1464_v14, %s2183_s0 }
 0x373   :  { %v1470_v16 = vpop.permute.xlu0 %1469  ;;  %v1467_v18 = vpop.permute.xlu1 %1466 }
 0x374   :  { %v1468_v21 = vadd.f32 %v1467_v18, %v2489_v17  ;;  %v1471_v25 = vadd.f32 %v1470_v16, %v2493_v24 }
 0x376   :  { %v1472_v26 = vmax.f32 %v1464_v14, %v1468_v21 }
 0x378   :  { %v1473_v28 = vmax.f32 %v1472_v26, %v1471_v25 }
 0x37a   :  { %v1474_v49 = vsub.f32 %v1464_v14, %v1473_v28  ;;  %v1477_v31 = vsub.f32 %v1468_v21, %v1473_v28  ;;  %v1481_v32 = vsub.f32 %v1471_v25, %v1473_v28 }
 0x37c   :  { %v1475_v20 = vmul.f32 1.442695, %v1474_v49  ;;  %v1478_v33 = vmul.f32 1.442695, %v1477_v31  ;;  %v1482_v35 = vmul.f32 1.442695, %v1481_v32 }
 0x37e   :  { %2000 = vpow2.f32 %v1475_v20 }
 0x37f   :  { %2002 = vpow2.f32 %v1478_v33 }
 0x380   :  { %2004 = vpow2.f32 %v1482_v35 }
 0x38b   :  { %v2001_v37 = vpop.eup %2000 }
 0x38c   :  { %v2003_v29 = vpop.eup %2002 }
 0x38d   :  { %v1480_v38 = vadd.f32 %v2003_v29, %v2001_v37  ;;  %v2005_v39 = vpop.eup %2004 }
 0x38f   :  { %v1484_v40 = vadd.f32 %v2005_v39, %v1480_v38 }
 0x391   :  { %2006 = vlog2.f32 %v1484_v40 }
 0x39e   :  { %v2007_v42 = vpop.eup %2006 }
 0x39f   :  { %v1486_v43 = vmul.f32 0.6931472, %v2007_v42 }
 0x3a1   :  { %v1487_v46 = vadd.f32 %v1486_v43, %v1473_v28 }
 0x3a3   :  { %v1488_v34 = vadd.f32 %v1487_v46, %v1465_v52  ;;  %v1513_v46 = vld [vmem:[#allocation2 + $0x28] sm:$0xff] }
 0x3a5   :  { %1493 = vrot.lane.b32.xlu0 %v1488_v34, %s2181_s29  ;;  %1490 = vrot.lane.b32.xlu1 %v1488_v34, %s2183_s0 }
 0x417   :  { %v1494_v47 = vpop.permute.xlu0 %1493  ;;  %v1491_v50 = vpop.permute.xlu1 %1490 }
 0x418   :  { %v1492_v51 = vadd.f32 %v1491_v50, %v2489_v17  ;;  %v1495_v53 = vadd.f32 %v1494_v47, %v2493_v24  ;;  %v150_v47 = vsel %vm146_vm0, %v2327_v45, -inf  ;;  %v156_v50 = vsel %vm146_vm0, %v2334_v55, -inf }
 0x41a   :  { %v1496_v54 = vmax.f32 %v1488_v34, %v1492_v51 }
 0x41c   :  { %v1497_v36 = vmax.f32 %v1496_v54, %v1495_v53  ;;  %v180_v54 = vsel %vm146_vm0, %v2373_v7, -inf }
 0x41e   :  { %v1498_v56 = vsub.f32 %v1488_v34, %v1497_v36  ;;  %v1501_v57 = vsub.f32 %v1492_v51, %v1497_v36  ;;  %v1505_v60 = vsub.f32 %v1495_v53, %v1497_v36  ;;  %v162_v34 = vsel %vm146_vm0, %v2345_v59, -inf }
 0x41f   :  { %v168_v51 = vsel %vm146_vm0, %v2353_v61, -inf  ;;  %v174_v53 = vsel %vm146_vm0, %v2363_v1, -inf }
 0x420   :  { %v1499_v62 = vmul.f32 1.442695, %v1498_v56  ;;  %v1502_v11 = vmul.f32 1.442695, %v1501_v57  ;;  %v1506_v15 = vmul.f32 1.442695, %v1505_v60 }
 0x422   :  { %2008 = vpow2.f32 %v1499_v62 }
 0x423   :  { %2010 = vpow2.f32 %v1502_v11 }
 0x424   :  { %2012 = vpow2.f32 %v1506_v15 }
 0x42f   :  { %v2009_v19 = vpop.eup %2008 }
 0x430   :  { %v2011_v0 = vpop.eup %2010 }
 0x431   :  { %v1504_v2 = vadd.f32 %v2011_v0, %v2009_v19  ;;  %v2013_v22 = vpop.eup %2012 }
 0x433   :  { %v1508_v3 = vadd.f32 %v2013_v22, %v1504_v2 }
 0x435   :  { %2014 = vlog2.f32 %v1508_v3 }
 0x442   :  { %v2015_v41 = vpop.eup %2014 }
 0x443   :  { %v1510_v4 = vmul.f32 0.6931472, %v2015_v41 }
 0x445   :  { %v1511_v44 = vadd.f32 %v1510_v4, %v1497_v36 }
 0x447   :  { %v1512_v10 = vadd.f32 %v1511_v44, %v1489_v9 }
 0x449   :  { %1517 = vrot.lane.b32.xlu0 %v1512_v10, %s2181_s29  ;;  %1514 = vrot.lane.b32.xlu1 %v1512_v10, %s2183_s0 }
 0x4bb   :  { %v1518_v14 = vpop.permute.xlu0 %1517  ;;  %v1515_v16 = vpop.permute.xlu1 %1514 }
 0x4bc   :  { %v1516_v18 = vadd.f32 %v1515_v16, %v2489_v17  ;;  %v1519_v21 = vadd.f32 %v1518_v14, %v2493_v24 }
 0x4be   :  { %v1520_v25 = vmax.f32 %v1512_v10, %v1516_v18 }
 0x4c0   :  { %v1521_v26 = vmax.f32 %v1520_v25, %v1519_v21 }
 0x4c2   :  { %v1522_v28 = vsub.f32 %v1512_v10, %v1521_v26  ;;  %v1525_v49 = vsub.f32 %v1516_v18, %v1521_v26  ;;  %v1529_v31 = vsub.f32 %v1519_v21, %v1521_v26  ;;  %v1537_v21 = vld [vmem:[#allocation2 + $0x30] sm:$0xff] }
 0x4c4   :  { %v1523_v32 = vmul.f32 1.442695, %v1522_v28  ;;  %v1526_v20 = vmul.f32 1.442695, %v1525_v49  ;;  %v1530_v33 = vmul.f32 1.442695, %v1529_v31 }
 0x4c6   :  { %2016 = vpow2.f32 %v1523_v32 }
 0x4c7   :  { %2018 = vpow2.f32 %v1526_v20 }
 0x4c8   :  { %2020 = vpow2.f32 %v1530_v33 }
 0x4d3   :  { %v2017_v35 = vpop.eup %2016 }
 0x4d4   :  { %v2019_v37 = vpop.eup %2018 }
 0x4d5   :  { %v1528_v29 = vadd.f32 %v2019_v37, %v2017_v35  ;;  %v2021_v38 = vpop.eup %2020 }
 0x4d7   :  { %v1532_v39 = vadd.f32 %v2021_v38, %v1528_v29 }
 0x4d9   :  { %2022 = vlog2.f32 %v1532_v39 }
 0x4e6   :  { %v2023_v40 = vpop.eup %2022 }
 0x4e7   :  { %v1534_v42 = vmul.f32 0.6931472, %v2023_v40 }
 0x4e9   :  { %v1535_v43 = vadd.f32 %v1534_v42, %v1521_v26 }
 0x4eb   :  { %v1536_v52 = vadd.f32 %v1535_v43, %v1513_v46 }
 0x4ed   :  { %1541 = vrot.lane.b32.xlu0 %v1536_v52, %s2181_s29  ;;  %1538 = vrot.lane.b32.xlu1 %v1536_v52, %s2183_s0 }
 0x50c   :  { %163 = vmax.xlane.f32.xlu0 %v162_v34 }
 0x510   :  { %151 = vmax.xlane.f32.xlu0 %v150_v47 }
 0x511   :  { %157 = vmax.xlane.f32.xlu1 %v156_v50 }
 0x514   :  { %169 = vmax.xlane.f32.xlu0 %v168_v51 }
 0x515   :  { %175 = vmax.xlane.f32.xlu1 %v174_v53 }
 0x518   :  { %181 = vmax.xlane.f32.xlu0 %v180_v54 }
 0x55f   :  { %v1542_v36 = vpop.permute.xlu0 %1541  ;;  %v1539_v56 = vpop.permute.xlu1 %1538 }
 0x560   :  { %v1540_v57 = vadd.f32 %v1539_v56, %v2489_v17  ;;  %v1543_v60 = vadd.f32 %v1542_v36, %v2493_v24 }
 0x562   :  { %v1544_v62 = vmax.f32 %v1536_v52, %v1540_v57 }
 0x564   :  { %v1545_v11 = vmax.f32 %v1544_v62, %v1543_v60 }
 0x566   :  { %v1546_v15 = vsub.f32 %v1536_v52, %v1545_v11  ;;  %v1549_v19 = vsub.f32 %v1540_v57, %v1545_v11  ;;  %v1553_v0 = vsub.f32 %v1543_v60, %v1545_v11 }
 0x568   :  { %v1547_v2 = vmul.f32 1.442695, %v1546_v15  ;;  %v1550_v22 = vmul.f32 1.442695, %v1549_v19  ;;  %v1554_v3 = vmul.f32 1.442695, %v1553_v0 }
 0x56a   :  { %2024 = vpow2.f32 %v1547_v2 }
 0x56b   :  { %2026 = vpow2.f32 %v1550_v22 }
 0x56c   :  { %2028 = vpow2.f32 %v1554_v3 }
 0x577   :  { %v2025_v41 = vpop.eup %2024 }
 0x578   :  { %v2027_v4 = vpop.eup %2026 }
 0x579   :  { %v1552_v44 = vadd.f32 %v2027_v4, %v2025_v41  ;;  %v2029_v9 = vpop.eup %2028 }
 0x57b   :  { %v1556_v10 = vadd.f32 %v2029_v9, %v1552_v44 }
 0x57d   :  { %2030 = vlog2.f32 %v1556_v10 }
 0x58a   :  { %v2031_v14 = vpop.eup %2030 }
 0x58b   :  { %v1558_v16 = vmul.f32 0.6931472, %v2031_v14 }
 0x58d   :  { %v1559_v18 = vadd.f32 %v1558_v16, %v1545_v11 }
 0x58f   :  { %v2528_v25 = vadd.f32 %v1559_v18, %v1537_v21 }
 0x591   :  { %1565 = vrot.lane.b32.xlu0 %v2528_v25, %s2181_s29  ;;  %1562 = vrot.lane.b32.xlu1 %v2528_v25, %s2183_s0 }
 0x595   :  { %v164_v26 = vpop.xlane.xlu0 %163 }
 0x596   :  { %v2534_v28 = vmax.f32 %v164_v26, -1e+30 }
 0x598   :  { %v216_v49 = vsub.f32 %v2345_v59, %v2534_v28 }
 0x599   :  { %v152_v31 = vpop.xlane.xlu0 %151 }
 0x59a   :  { %v158_v32 = vpop.xlane.xlu1 %157  ;;  %v237_v33 = vmul.f32 1.442695, %v216_v49  ;;  %v2542_v29 = vmax.f32 %v152_v31, -1e+30 }
 0x59b   :  { %v2538_v20 = vmax.f32 %v158_v32, -1e+30 }
 0x59c   :  { %2032 = vpow2.f32 %v237_v33  ;;  %v212_v43 = vsub.f32 %v2327_v45, %v2542_v29  ;;  %v192_v45 = vsel %vm146_vm0, %v2393_v8, -inf }
 0x59d   :  { %v170_v35 = vpop.xlane.xlu0 %169  ;;  %v214_v37 = vsub.f32 %v2334_v55, %v2538_v20 }
 0x59e   :  { %v2544_v38 = vmax.f32 %v170_v35, -1e+30  ;;  %v176_v39 = vpop.xlane.xlu1 %175  ;;  %v229_v47 = vmul.f32 1.442695, %v212_v43  ;;  %v264_v35 = vsub.f32 -1e+30, %v2534_v28 }
 0x59f   :  { %v233_v42 = vmul.f32 1.442695, %v214_v37  ;;  %v2552_v34 = vmax.f32 %v176_v39, -1e+30 }
 0x5a0   :  { %v218_v40 = vsub.f32 %v2353_v61, %v2544_v38  ;;  %v285_v37 = vmul.f32 1.442695, %v264_v35  ;;  %v266_v39 = vsub.f32 -1e+30, %v2544_v38 }
 0x5a1   :  { %v182_v59 = vpop.xlane.xlu0 %181  ;;  %v220_v61 = vsub.f32 %v2363_v1, %v2552_v34 }
 0x5a2   :  { %v241_v46 = vmul.f32 1.442695, %v218_v40  ;;  %v2550_v52 = vmax.f32 %v182_v59, -1e+30  ;;  %v289_v40 = vmul.f32 1.442695, %v266_v39 }
 0x5a3   :  { %v245_v51 = vmul.f32 1.442695, %v220_v61  ;;  %v260_v59 = vsub.f32 -1e+30, %v2542_v29  ;;  %v268_v61 = vsub.f32 -1e+30, %v2552_v34 }
 0x5a4   :  { %v222_v55 = vsub.f32 %v2373_v7, %v2550_v52  ;;  %2034 = vpow2.f32 %v241_v46  ;;  %v186_v7 = vsel %vm146_vm0, %v2382_v63, -inf }
 0x5a5   :  { %2036 = vpow2.f32 %v233_v42  ;;  %v270_v42 = vsub.f32 -1e+30, %v2550_v52 }
 0x5a6   :  { %v249_v50 = vmul.f32 1.442695, %v222_v55 }
 0x5a8   :  { %2038 = vpow2.f32 %v249_v50  ;;  %v277_v50 = vmul.f32 1.442695, %v260_v59 }
 0x5a9   :  { %2040 = vpow2.f32 %v229_v47  ;;  %v2033_v53 = vpop.eup %2032  ;;  %v297_v47 = vmul.f32 1.442695, %v270_v42 }
 0x5aa   :  { %2042 = vpow2.f32 %v245_v51  ;;  %v338_v54 = vsel %vm146_vm0, %v2033_v53, 0.0 }
 0x5b0   :  { %193 = vmax.xlane.f32.xlu0 %v192_v45  ;;  %v1561_v45 = vld [vmem:[#allocation2 + $0x38] sm:$0xff] }
 0x5b1   :  { %v2035_v36 = vpop.eup %2034 }
 0x5b2   :  { %v2037_v56 = vpop.eup %2036  ;;  %v344_v1 = vsel %vm146_vm0, %v2035_v36, 0.0 }
 0x5b3   :  { %v332_v60 = vsel %vm146_vm0, %v2037_v56, 0.0 }
 0x5b4   :  { %339 = vadd.xlane.f32.xlu0 %v338_v54  ;;  %v293_v54 = vmul.f32 1.442695, %v268_v61 }
 0x5b5   :  { %187 = vmax.xlane.f32.xlu1 %v186_v7  ;;  %v2039_v57 = vpop.eup %2038 }
 0x5b6   :  { %v2041_v62 = vpop.eup %2040  ;;  %v356_v11 = vsel %vm146_vm0, %v2039_v57, 0.0 }
 0x5b7   :  { %v326_v15 = vsel %vm146_vm0, %v2041_v62, 0.0  ;;  %v2043_v19 = vpop.eup %2042 }
 0x5b8   :  { %345 = vadd.xlane.f32.xlu0 %v344_v1  ;;  %v350_v0 = vsel %vm146_vm0, %v2043_v19, 0.0 }
 0x5b9   :  { %333 = vadd.xlane.f32.xlu1 %v332_v60 }
 0x5bc   :  { %357 = vadd.xlane.f32.xlu0 %v356_v11 }
 0x5bd   :  { %327 = vadd.xlane.f32.xlu1 %v326_v15 }
 0x5c1   :  { %351 = vadd.xlane.f32.xlu1 %v350_v0 }
 0x603   :  { %v1566_v2 = vpop.permute.xlu0 %1565  ;;  %v1563_v22 = vpop.permute.xlu1 %1562 }
 0x604   :  { %v1564_v3 = vadd.f32 %v1563_v22, %v2489_v17  ;;  %v1567_v41 = vadd.f32 %v1566_v2, %v2493_v24 }
 0x606   :  { %v1568_v4 = vmax.f32 %v2528_v25, %v1564_v3 }
 0x608   :  { %v1569_v44 = vmax.f32 %v1568_v4, %v1567_v41 }
 0x60a   :  { %v1570_v9 = vsub.f32 %v2528_v25, %v1569_v44  ;;  %v1573_v10 = vsub.f32 %v1564_v3, %v1569_v44  ;;  %v1577_v14 = vsub.f32 %v1567_v41, %v1569_v44  ;;  %v262_v25 = vsub.f32 -1e+30, %v2538_v20 }
 0x60c   :  { %v1571_v16 = vmul.f32 1.442695, %v1570_v9  ;;  %v1574_v18 = vmul.f32 1.442695, %v1573_v10  ;;  %v1578_v21 = vmul.f32 1.442695, %v1577_v14 }
 0x60d   :  { %v281_v43 = vmul.f32 1.442695, %v262_v25 }
 0x60e   :  { %2044 = vpow2.f32 %v1571_v16 }
 0x60f   :  { %2046 = vpow2.f32 %v1574_v18 }
 0x610   :  { %2048 = vpow2.f32 %v1578_v21 }
 0x61b   :  { %v2045_v26 = vpop.eup %2044 }
 0x61c   :  { %v2047_v49 = vpop.eup %2046 }
 0x61d   :  { %v1576_v31 = vadd.f32 %v2047_v49, %v2045_v26  ;;  %v2049_v32 = vpop.eup %2048 }
 0x61f   :  { %v1580_v33 = vadd.f32 %v2049_v32, %v1576_v31 }
 0x621   :  { %2050 = vlog2.f32 %v1580_v33 }
 0x622   :  { %2052 = vpow2.f32 %v285_v37 }
 0x623   :  { %2054 = vpow2.f32 %v289_v40 }
 0x624   :  { %2056 = vpow2.f32 %v281_v43 }
 0x625   :  { %2058 = vpow2.f32 %v297_v47 }
 0x626   :  { %2060 = vpow2.f32 %v277_v50 }
 0x627   :  { %2062 = vpow2.f32 %v293_v54 }
 0x62e   :  { %v2051_v46 = vpop.eup %2050 }
 0x62f   :  { %v1582_v55 = vmul.f32 0.6931472, %v2051_v46  ;;  %v2053_v36 = vpop.eup %2052 }
 0x630   :  { %v312_v57 = vmul.f32 0.0, %v2053_v36  ;;  %v2055_v60 = vpop.eup %2054 }
 0x631   :  { %v1583_v51 = vadd.f32 %v1582_v55, %v1569_v44  ;;  %v2057_v11 = vpop.eup %2056  ;;  %v314_v22 = vmul.f32 0.0, %v2055_v60 }
 0x632   :  { %v2059_v3 = vpop.eup %2058  ;;  %v310_v44 = vmul.f32 0.0, %v2057_v11 }
 0x633   :  { %v2578_v53 = vadd.f32 %v1583_v51, %v1561_v45  ;;  %v2061_v9 = vpop.eup %2060  ;;  %v318_v18 = vmul.f32 0.0, %v2059_v3 }
 0x634   :  { %v308_v26 = vmul.f32 0.0, %v2061_v9  ;;  %v2063_v49 = vpop.eup %2062 }
 0x635   :  { %1586 = vrot.lane.b32.xlu0 %v2578_v53, %s2183_s0 }
 0x639   :  { %v194_v7 = vpop.xlane.xlu0 %193 }
 0x63a   :  { %v2582_v56 = vmax.f32 %v194_v7, -1e+30 }
 0x63c   :  { %v226_v1 = vsub.f32 %v2393_v8, %v2582_v56 }
 0x63d   :  { %v340_v62 = vpop.xlane.xlu0 %339 }
 0x63e   :  { %v376_v15 = vadd.f32 %v340_v62, %v312_v57  ;;  %v188_v19 = vpop.xlane.xlu1 %187  ;;  %v257_v0 = vmul.f32 1.442695, %v226_v1 }
 0x63f   :  { %v2586_v2 = vmax.f32 %v188_v19, -1e+30 }
 0x640   :  { %2064 = vlog2.f32 %v376_v15 }
 0x641   :  { %v224_v41 = vsub.f32 %v2382_v63, %v2586_v2  ;;  %v346_v4 = vpop.xlane.xlu0 %345  ;;  %2066 = vpow2.f32 %v257_v0  ;;  %v316_v63 = vmul.f32 0.0, %v2063_v49 }
 0x642   :  { %v378_v10 = vadd.f32 %v346_v4, %v314_v22  ;;  %v334_v8 = vpop.xlane.xlu1 %333 }
 0x643   :  { %v253_v14 = vmul.f32 1.442695, %v224_v41  ;;  %v374_v16 = vadd.f32 %v334_v8, %v310_v44 }
 0x644   :  { %2068 = vlog2.f32 %v378_v10 }
 0x645   :  { %2070 = vpow2.f32 %v253_v14  ;;  %v358_v21 = vpop.xlane.xlu0 %357 }
 0x646   :  { %2072 = vlog2.f32 %v374_v16  ;;  %v382_v31 = vadd.f32 %v358_v21, %v318_v18  ;;  %v328_v32 = vpop.xlane.xlu1 %327 }
 0x647   :  { %v372_v33 = vadd.f32 %v328_v32, %v308_v26 }
 0x649   :  { %2074 = vlog2.f32 %v372_v33 }
 0x64a   :  { %2076 = vlog2.f32 %v382_v31  ;;  %v352_v35 = vpop.xlane.xlu1 %351 }
 0x64b   :  { %v380_v37 = vadd.f32 %v352_v35, %v316_v63 }
 0x64d   :  { %2078 = vlog2.f32 %v380_v37  ;;  %v2065_v39 = vpop.eup %2064 }
 0x64e   :  { %v1151_v25 = vmul.f32 0.6931472, %v2065_v39  ;;  %v2067_v40 = vpop.eup %2066 }
 0x64f   :  { %v368_v45 = vsel %vm146_vm0, %v2067_v40, 0.0 }
 0x650   :  { %v1177_v59 = vadd.f32 %v1151_v25, %v2534_v28 }
 0x651   :  { %v2069_v42 = vpop.eup %2068 }
 0x652   :  { %v2071_v43 = vpop.eup %2070  ;;  %v1155_v46 = vmul.f32 0.6931472, %v2069_v42  ;;  %v1193_v50 = vsub.f32 %v2413_v30, %v1177_v59 }
 0x653   :  { %v2073_v55 = vpop.eup %2072  ;;  %v362_v47 = vsel %vm146_vm0, %v2071_v43, 0.0 }
 0x654   :  { %v1179_v61 = vadd.f32 %v1155_v46, %v2544_v38  ;;  %v1147_v51 = vmul.f32 0.6931472, %v2073_v55  ;;  %363 = vadd.xlane.f32.xlu1 %v362_v47  ;;  %v1322_v57 = vrot.slane %v1193_v50, 6  ;;  %v272_v46 = vsub.f32 -1e+30, %v2586_v2 }
 0x655   :  { %v274_v55 = vsub.f32 -1e+30, %v2582_v56 }
 0x656   :  { %v2075_v54 = vpop.eup %2074  ;;  %v1195_v36 = vsub.f32 %v2416_v27, %v1179_v61  ;;  %v1175_v7 = vadd.f32 %v1147_v51, %v2538_v20  ;;  %v301_v47 = vmul.f32 1.442695, %v272_v46 }
 0x657   :  { %v2077_v1 = vpop.eup %2076  ;;  %v1143_v28 = vmul.f32 0.6931472, %v2075_v54  ;;  %v305_v50 = vmul.f32 1.442695, %v274_v55 }
 0x658   :  { %v1324_v60 = vrot.slane %v1195_v36, 5  ;;  %v1191_v62 = vsub.f32 %v2410_v13, %v1175_v7  ;;  %369 = vadd.xlane.f32.xlu1 %v368_v45  ;;  %v1163_v19 = vmul.f32 0.6931472, %v2077_v1  ;;  %2080 = vpow2.f32 %v301_v47 }
 0x659   :  { %v1173_v30 = vadd.f32 %v1143_v28, %v2542_v29  ;;  %2082 = vpow2.f32 %v305_v50 }
 0x65a   :  { %v2079_v11 = vpop.eup %2078  ;;  %v1393_v38 = vsel %vm1213_vm1, %v1324_v60, %v1322_v57  ;;  %v1320_v15 = vrot.slane %v1191_v62, 7  ;;  %v1183_v13 = vadd.f32 %v1163_v19, %v2550_v52 }
 0x65b   :  { %v1189_v0 = vsub.f32 %v2407_v5, %v1173_v30  ;;  %v1159_v3 = vmul.f32 0.6931472, %v2079_v11 }
 0x65c   :  { %v1403_v27 = vsel %vm1213_vm1, %v1322_v57, %v1320_v15  ;;  %v1199_v26 = vsub.f32 %v2429_v58, %v1183_v13 }
 0x65d   :  { %v1321_v20 = vsel %vm1213_vm1, %v1320_v15, %v1189_v0  ;;  %v1337_v22 = vsel %vm1216_vm2, %v1320_v15, %v1189_v0  ;;  %1412 = vst [vmem:[#allocation2 + $0x71] sm:$0x80] %v1189_v0  ;;  %v1370_v4 = vsel %vm1225_vm6, %v1320_v15, %v1189_v0  ;;  %v1381_v44 = vsel %vm1228_vm7, %v1320_v15, %v1189_v0 }
 0x65e   :  { %v1323_v41 = vsel %vm1216_vm2, %v1322_v57, %v1321_v20  ;;  %v1338_v29 = vsel %vm1219_vm3, %v1322_v57, %v1337_v22  ;;  %v1392_v5 = vsel %vm1231_vm8, %v1320_v15, %v1189_v0  ;;  %v1348_v10 = vsel %vm1219_vm3, %v1320_v15, %v1189_v0 }
 0x65f   :  { %v1325_v9 = vsel %vm1219_vm3, %v1324_v60, %v1323_v41  ;;  %v1371_v8 = vsel %vm1228_vm7, %v1322_v57, %v1370_v4  ;;  %1401 = vst [vmem:[#allocation2 + $0x6a] sm:$0xc0] %v1392_v5  ;;  %v1339_v14 = vsel %vm1222_vm4, %v1324_v60, %v1338_v29  ;;  %v1404_v52 = vsel %vm1216_vm2, %v1324_v60, %v1403_v27 }
 0x660   :  { %v1181_v16 = vadd.f32 %v1159_v3, %v2552_v34  ;;  %v1372_v18 = vsel %vm1231_vm8, %v1324_v60, %v1371_v8  ;;  %v1382_v21 = vsel %vm1231_vm8, %v1322_v57, %v1381_v44  ;;  %v1349_v49 = vsel %vm1222_vm4, %v1322_v57, %v1348_v10 }
 0x661   :  { %1379 = vst [vmem:[#allocation2 + $0x5c] sm:$0xf0] %v1372_v18  ;;  %1390 = vst [vmem:[#allocation2 + $0x63] sm:$0xe0] %v1382_v21  ;;  %v1359_v31 = vsel %vm1222_vm4, %v1320_v15, %v1189_v0  ;;  %v1350_v35 = vsel %vm1225_vm6, %v1324_v60, %v1349_v49  ;;  %v2624_v34 = vrot.slane %v1199_v26, 3 }
 0x662   :  { %v1197_v32 = vsub.f32 %v2423_v48, %v1181_v16  ;;  %v1360_v63 = vsel %vm1225_vm6, %v1322_v57, %v1359_v31 }
 0x663   :  { %v1361_v59 = vsel %vm1228_vm7, %v1324_v60, %v1360_v63 }
 0x664   :  { %v1326_v33 = vrot.slane %v1197_v32, 4 }
 0x665   :  { %v2081_v61 = vpop.eup %2080 }
 0x666   :  { %v1327_v37 = vsel %vm1222_vm4, %v1326_v33, %v1325_v9  ;;  %v1340_v39 = vsel %vm1225_vm6, %v1326_v33, %v1339_v14  ;;  %v1351_v25 = vsel %vm1228_vm7, %v1326_v33, %v1350_v35  ;;  %v1383_v58 = vsel %vm1213_vm1, %v1326_v33, %v1324_v60  ;;  %v2083_v45 = vpop.eup %2082 }
 0x667   :  { %v1394_v40 = vsel %vm1216_vm2, %v1326_v33, %v1393_v38  ;;  %v1405_v42 = vsel %vm1219_vm3, %v1326_v33, %v1404_v52  ;;  %v1352_v48 = vsel %vm1231_vm8, %v2624_v34, %v1351_v25  ;;  %v1362_v43 = vsel %vm1231_vm8, %v1326_v33, %v1361_v59 }
 0x668   :  { %1357 = vst [vmem:[#allocation2 + $0x4e] sm:$0xfc] %v1352_v48  ;;  %1368 = vst [vmem:[#allocation2 + $0x55] sm:$0xf8] %v1362_v43  ;;  %v320_v51 = vmul.f32 0.0, %v2081_v61  ;;  %v322_v1 = vmul.f32 0.0, %v2083_v45  ;;  %v1373_v14 = vsel %vm1213_vm1, %v2624_v34, %v1326_v33  ;;  %v1395_v52 = vsel %vm1219_vm3, %v2624_v34, %v1394_v40 }
 0x669   :  { %1589 = vrot.lane.b32.xlu1 %v2578_v53, %s2181_s29  ;;  %v1406_v18 = vsel %vm1222_vm4, %v2624_v34, %v1405_v42 }
 0x6a7   :  { %v1587_v7 = vpop.permute.xlu0 %1586 }
 0x6a8   :  { %v1588_v57 = vadd.f32 %v1587_v7, %v2489_v17 }
 0x6aa   :  { %v1592_v30 = vmax.f32 %v2578_v53, %v1588_v57 }
 0x6dd   :  { %v364_v54 = vpop.xlane.xlu1 %363 }
 0x6de   :  { %v384_v36 = vadd.f32 %v364_v54, %v320_v51 }
 0x6e0   :  { %2084 = vlog2.f32 %v384_v36 }
 0x6e1   :  { %v370_v28 = vpop.xlane.xlu1 %369 }
 0x6e2   :  { %v386_v60 = vadd.f32 %v370_v28, %v322_v1 }
 0x6e4   :  { %2086 = vlog2.f32 %v386_v60 }
 0x6e5   :  { %v1590_v62 = vpop.permute.xlu1 %1589 }
 0x6e6   :  { %v1591_v11 = vadd.f32 %v1590_v62, %v2493_v24 }
 0x6e8   :  { %v1593_v38 = vmax.f32 %v1592_v30, %v1591_v11 }
 0x6ea   :  { %v1594_v15 = vsub.f32 %v2578_v53, %v1593_v38  ;;  %v1597_v19 = vsub.f32 %v1588_v57, %v1593_v38  ;;  %v1601_v0 = vsub.f32 %v1591_v11, %v1593_v38  ;;  %v1341_v53 = vsel %vm1228_vm7, %v2624_v34, %v1340_v39 }
 0x6ec   :  { %v1595_v27 = vmul.f32 1.442695, %v1594_v15  ;;  %v1598_v20 = vmul.f32 1.442695, %v1597_v19  ;;  %v1602_v3 = vmul.f32 1.442695, %v1601_v0 }
 0x6ed   :  { %v2085_v22 = vpop.eup %2084 }
 0x6ee   :  { %v1167_v13 = vmul.f32 0.6931472, %v2085_v22  ;;  %2088 = vpow2.f32 %v1595_v27 }
 0x6ef   :  { %2090 = vpow2.f32 %v1598_v20 }
 0x6f0   :  { %v1185_v41 = vadd.f32 %v1167_v13, %v2586_v2  ;;  %2092 = vpow2.f32 %v1602_v3  ;;  %v1329_v2 = vsel %vm1225_vm6, %v2624_v34, %v1327_v37 }
 0x6f1   :  { %v2087_v29 = vpop.eup %2086 }
 0x6f2   :  { %v1201_v4 = vsub.f32 %v2439_v6, %v1185_v41  ;;  %v1171_v44 = vmul.f32 0.6931472, %v2087_v29  ;;  %v1384_v6 = vsel %vm1216_vm2, %v2624_v34, %v1383_v58 }
 0x6f4   :  { %v1330_v5 = vrot.slane %v1201_v4, 2  ;;  %v1187_v9 = vadd.f32 %v1171_v44, %v2582_v56 }
 0x6f6   :  { %v1203_v10 = vsub.f32 %v2446_v23, %v1187_v9  ;;  %v1342_v8 = vsel %vm1231_vm8, %v1330_v5, %v1341_v53  ;;  %v1331_v56 = vsel %vm1228_vm7, %v1330_v5, %v1329_v2  ;;  %v1363_v23 = vsel %vm1213_vm1, %v1330_v5, %v2624_v34 }
 0x6f7   :  { %1346 = vst [vmem:[#allocation2 + $0x47] sm:$0xfe] %v1342_v8  ;;  %v1374_v21 = vsel %vm1216_vm2, %v1330_v5, %v1373_v14  ;;  %v1385_v26 = vsel %vm1219_vm3, %v1330_v5, %v1384_v6  ;;  %v1396_v49 = vsel %vm1222_vm4, %v1330_v5, %v1395_v52  ;;  %v1407_v31 = vsel %vm1225_vm6, %v1330_v5, %v1406_v18 }
 0x6f8   :  { %v1332_v16 = vrot.slane %v1203_v10, 1 }
 0x6fa   :  { %1347 = vst [vmem:[#allocation2 + $0x4f] sm:$0x1] %v1332_v16  ;;  %v1333_v33 = vsel %vm1231_vm8, %v1332_v16, %v1331_v56  ;;  %v1353_v63 = vsel %vm1213_vm1, %v1332_v16, %v1330_v5  ;;  %v1364_v35 = vsel %vm1216_vm2, %v1332_v16, %v1363_v23  ;;  %v1375_v37 = vsel %vm1219_vm3, %v1332_v16, %v1374_v21 }
 0x6fb   :  { %v2089_v32 = vpop.eup %2088  ;;  %1358 = vst [vmem:[#allocation2 + $0x56] sm:$0x3] %v1353_v63  ;;  %1369 = vst [vmem:[#allocation2 + $0x5d] sm:$0x7] %v1364_v35  ;;  %v1386_v34 = vsel %vm1222_vm4, %v1332_v16, %v1385_v26  ;;  %v1397_v25 = vsel %vm1225_vm6, %v1332_v16, %v1396_v49  ;;  %v1408_v58 = vsel %vm1228_vm7, %v1332_v16, %v1407_v31 }
 0x6fc   :  { %v2091_v39 = vpop.eup %2090  ;;  %1380 = vst [vmem:[#allocation2 + $0x64] sm:$0xf] %v1375_v37  ;;  %1391 = vst [vmem:[#allocation2 + $0x6b] sm:$0x1f] %v1386_v34 }
 0x6fd   :  { %v1600_v40 = vadd.f32 %v2091_v39, %v2089_v32  ;;  %1402 = vst [vmem:[#allocation2 + $0x72] sm:$0x3f] %v1397_v25  ;;  %1413 = vst [vmem:[#allocation2 + $0x79] sm:$0x7f] %v1408_v58  ;;  %v2093_v42 = vpop.eup %2092 }
 0x6ff   :  { %v1604_v48 = vadd.f32 %v2093_v42, %v1600_v40 }
 0x701   :  { %2094 = vlog2.f32 %v1604_v48  ;;  %v1609_v20 = vld [vmem:[#allocation2 + $0x48] sm:$0xff] }
 0x702   :  { %v1633_v26 = vld [vmem:[#allocation2 + $0x50] sm:$0xff] }
 0x70e   :  { %v2095_v59 = vpop.eup %2094 }
 0x70f   :  { %v1606_v43 = vmul.f32 0.6931472, %v2095_v59 }
 0x711   :  { %v1607_v46 = vadd.f32 %v1606_v43, %v1593_v38 }
 0x713   :  { %v1608_v55 = vadd.f32 %v1607_v46, %v1333_v33 }
 0x715   :  { %1613 = vrot.lane.b32.xlu0 %v1608_v55, %s2181_s29  ;;  %1610 = vrot.lane.b32.xlu1 %v1608_v55, %s2183_s0 }
 0x787   :  { %v1614_v47 = vpop.permute.xlu0 %1613  ;;  %v1611_v50 = vpop.permute.xlu1 %1610 }
 0x788   :  { %v1612_v61 = vadd.f32 %v1611_v50, %v2489_v17  ;;  %v1615_v51 = vadd.f32 %v1614_v47, %v2493_v24 }
 0x78a   :  { %v1616_v45 = vmax.f32 %v1608_v55, %v1612_v61 }
 0x78c   :  { %v1617_v54 = vmax.f32 %v1616_v45, %v1615_v51 }
 0x78e   :  { %v1618_v36 = vsub.f32 %v1608_v55, %v1617_v54  ;;  %v1621_v7 = vsub.f32 %v1612_v61, %v1617_v54  ;;  %v1625_v1 = vsub.f32 %v1615_v51, %v1617_v54  ;;  %v1657_v51 = vld [vmem:[#allocation2 + $0x58] sm:$0xff] }
 0x790   :  { %v1619_v28 = vmul.f32 1.442695, %v1618_v36  ;;  %v1622_v57 = vmul.f32 1.442695, %v1621_v7  ;;  %v1626_v60 = vmul.f32 1.442695, %v1625_v1 }
 0x792   :  { %2096 = vpow2.f32 %v1619_v28 }
 0x793   :  { %2098 = vpow2.f32 %v1622_v57 }
 0x794   :  { %2100 = vpow2.f32 %v1626_v60 }
 0x79f   :  { %v2097_v62 = vpop.eup %2096 }
 0x7a0   :  { %v2099_v30 = vpop.eup %2098 }
 0x7a1   :  { %v1624_v11 = vadd.f32 %v2099_v30, %v2097_v62  ;;  %v2101_v38 = vpop.eup %2100 }
 0x7a3   :  { %v1628_v15 = vadd.f32 %v2101_v38, %v1624_v11 }
 0x7a5   :  { %2102 = vlog2.f32 %v1628_v15 }
 0x7b2   :  { %v2103_v19 = vpop.eup %2102 }
 0x7b3   :  { %v1630_v0 = vmul.f32 0.6931472, %v2103_v19 }
 0x7b5   :  { %v1631_v27 = vadd.f32 %v1630_v0, %v1617_v54 }
 0x7b7   :  { %v1632_v22 = vadd.f32 %v1631_v27, %v1609_v20 }
 0x7b9   :  { %1637 = vrot.lane.b32.xlu0 %v1632_v22, %s2181_s29  ;;  %1634 = vrot.lane.b32.xlu1 %v1632_v22, %s2183_s0 }
 0x82b   :  { %v1638_v3 = vpop.permute.xlu0 %1637  ;;  %v1635_v13 = vpop.permute.xlu1 %1634 }
 0x82c   :  { %v1636_v41 = vadd.f32 %v1635_v13, %v2489_v17  ;;  %v1639_v29 = vadd.f32 %v1638_v3, %v2493_v24 }
 0x82e   :  { %v1640_v4 = vmax.f32 %v1632_v22, %v1636_v41 }
 0x830   :  { %v1641_v44 = vmax.f32 %v1640_v4, %v1639_v29 }
 0x832   :  { %v1642_v5 = vsub.f32 %v1632_v22, %v1641_v44  ;;  %v1645_v9 = vsub.f32 %v1636_v41, %v1641_v44  ;;  %v1649_v53 = vsub.f32 %v1639_v29, %v1641_v44  ;;  %v1681_v29 = vld [vmem:[#allocation2 + $0x60] sm:$0xff] }
 0x834   :  { %v1643_v10 = vmul.f32 1.442695, %v1642_v5  ;;  %v1646_v8 = vmul.f32 1.442695, %v1645_v9  ;;  %v1650_v14 = vmul.f32 1.442695, %v1649_v53 }
 0x836   :  { %2104 = vpow2.f32 %v1643_v10 }
 0x837   :  { %2106 = vpow2.f32 %v1646_v8 }
 0x838   :  { %2108 = vpow2.f32 %v1650_v14 }
 0x843   :  { %v2105_v2 = vpop.eup %2104 }
 0x844   :  { %v2107_v6 = vpop.eup %2106 }
 0x845   :  { %v1648_v52 = vadd.f32 %v2107_v6, %v2105_v2  ;;  %v2109_v56 = vpop.eup %2108 }
 0x847   :  { %v1652_v23 = vadd.f32 %v2109_v56, %v1648_v52 }
 0x849   :  { %2110 = vlog2.f32 %v1652_v23 }
 0x856   :  { %v2111_v16 = vpop.eup %2110 }
 0x857   :  { %v1654_v18 = vmul.f32 0.6931472, %v2111_v16 }
 0x859   :  { %v1655_v21 = vadd.f32 %v1654_v18, %v1641_v44 }
 0x85b   :  { %v1656_v49 = vadd.f32 %v1655_v21, %v1633_v26 }
 0x85d   :  { %1661 = vrot.lane.b32.xlu0 %v1656_v49, %s2181_s29  ;;  %1658 = vrot.lane.b32.xlu1 %v1656_v49, %s2183_s0 }
 0x8cf   :  { %v1662_v31 = vpop.permute.xlu0 %1661  ;;  %v1659_v32 = vpop.permute.xlu1 %1658 }
 0x8d0   :  { %v1660_v33 = vadd.f32 %v1659_v32, %v2489_v17  ;;  %v1663_v63 = vadd.f32 %v1662_v31, %v2493_v24 }
 0x8d2   :  { %v1664_v35 = vmax.f32 %v1656_v49, %v1660_v33 }
 0x8d4   :  { %v1665_v37 = vmax.f32 %v1664_v35, %v1663_v63 }
 0x8d6   :  { %v1666_v39 = vsub.f32 %v1656_v49, %v1665_v37  ;;  %v1669_v34 = vsub.f32 %v1660_v33, %v1665_v37  ;;  %v1673_v25 = vsub.f32 %v1663_v63, %v1665_v37  ;;  %v1705_v63 = vld [vmem:[#allocation2 + $0x68] sm:$0xff] }
 0x8d8   :  { %v1667_v58 = vmul.f32 1.442695, %v1666_v39  ;;  %v1670_v40 = vmul.f32 1.442695, %v1669_v34  ;;  %v1674_v42 = vmul.f32 1.442695, %v1673_v25 }
 0x8da   :  { %2112 = vpow2.f32 %v1667_v58 }
 0x8db   :  { %2114 = vpow2.f32 %v1670_v40 }
 0x8dc   :  { %2116 = vpow2.f32 %v1674_v42 }
 0x8e7   :  { %v2113_v48 = vpop.eup %2112 }
 0x8e8   :  { %v2115_v59 = vpop.eup %2114 }
 0x8e9   :  { %v1672_v43 = vadd.f32 %v2115_v59, %v2113_v48  ;;  %v2117_v46 = vpop.eup %2116 }
 0x8eb   :  { %v1676_v55 = vadd.f32 %v2117_v46, %v1672_v43 }
 0x8ed   :  { %2118 = vlog2.f32 %v1676_v55 }
 0x8fa   :  { %v2119_v47 = vpop.eup %2118 }
 0x8fb   :  { %v1678_v50 = vmul.f32 0.6931472, %v2119_v47 }
 0x8fd   :  { %v1679_v61 = vadd.f32 %v1678_v50, %v1665_v37  ;;  %v2185_v37 = vmov 0  }
 0x8fe   :  { %1935 = vset.pattern.permute.xlu0 %v2185_v37  ;;  %1934 = vset.pattern.permute.xlu1 %v2185_v37 }
 0x8ff   :  { %v1680_v45 = vadd.f32 %v1679_v61, %v1657_v51 }
 0x901   :  { %1685 = vrot.lane.b32.xlu0 %v1680_v45, %s2181_s29  ;;  %1682 = vrot.lane.b32.xlu1 %v1680_v45, %s2183_s0 }
 0x973   :  { %v1686_v54 = vpop.permute.xlu0 %1685  ;;  %v1683_v36 = vpop.permute.xlu1 %1682 }
 0x974   :  { %v1684_v7 = vadd.f32 %v1683_v36, %v2489_v17  ;;  %v1687_v1 = vadd.f32 %v1686_v54, %v2493_v24 }
 0x976   :  { %v1688_v28 = vmax.f32 %v1680_v45, %v1684_v7 }
 0x978   :  { %v1689_v57 = vmax.f32 %v1688_v28, %v1687_v1 }
 0x97a   :  { %v1690_v60 = vsub.f32 %v1680_v45, %v1689_v57  ;;  %v1693_v62 = vsub.f32 %v1684_v7, %v1689_v57  ;;  %v1697_v30 = vsub.f32 %v1687_v1, %v1689_v57  ;;  %v1777_v7 = vld [vmem:[%s2713_s2] sm:$0xff]  ;;  %s2186_s2 = smov [#allocation3]  }
 0x97b   :  { %s1808_s21 = sshll.u32 %s2186_s2, 4  ;;  %s1809_s21 = int_to_ptr.vmem [resolvable:$true] %s1808_s21 }
 0x97c   :  { %v1691_v11 = vmul.f32 1.442695, %v1690_v60  ;;  %v1694_v38 = vmul.f32 1.442695, %v1693_v62  ;;  %v1698_v15 = vmul.f32 1.442695, %v1697_v30  ;;  %p2161_p1 = scmp.lt.s32.totalorder %s1809_s21, %s1809_s21 }
 0x97d   :  { %v1729_v60 = vld [vmem:[#allocation2 + $0x70] sm:$0xff]  ;;  %s2156_s22 = scalar_lea.vmem %s1809_s21, 128 }
 0x97e   :  { %2120 = vpow2.f32 %v1691_v11  ;;  %p2157_p0 = scmp.ne.s32.totalorder %s1809_s21, %s2156_s22  ;;  %p2162_p2 = scmp.lt.s32.totalorder %s2156_s22, %s2156_s22 }
 0x97f   :  { %2122 = vpow2.f32 %v1694_v38 }
 0x980   :  { %2124 = vpow2.f32 %v1698_v15  ;;  %p2163_p3 = por %p2162_p2, %p2161_p1 }
 0x982   :  { %p2164_p4 = pnand %p2163_p3, %p2157_p0 }
 0x98b   :  { %v2121_v19 = vpop.eup %2120 }
 0x98c   :  { %v2123_v0 = vpop.eup %2122 }
 0x98d   :  { %v1696_v27 = vadd.f32 %v2123_v0, %v2121_v19  ;;  %v2125_v20 = vpop.eup %2124 }
 0x98f   :  { %v1700_v22 = vadd.f32 %v2125_v20, %v1696_v27 }
 0x991   :  { %2126 = vlog2.f32 %v1700_v22 }
 0x99e   :  { %v2127_v3 = vpop.eup %2126 }
 0x99f   :  { %v1702_v13 = vmul.f32 0.6931472, %v2127_v3 }
 0x9a1   :  { %v1703_v41 = vadd.f32 %v1702_v13, %v1689_v57  ;;  %v1778_v57 = vmul.u32 2, %v1777_v7 }
 0x9a3   :  { %v1704_v4 = vadd.f32 %v1703_v41, %v1681_v29  ;;  %v1851_v30 = vadd.s32 4294967295, %v1778_v57 }
 0x9a5   :  { %1709 = vrot.lane.b32.xlu0 %v1704_v4, %s2181_s29  ;;  %1706 = vrot.lane.b32.xlu1 %v1704_v4, %s2183_s0 }
 0xa17   :  { %v1710_v44 = vpop.permute.xlu0 %1709  ;;  %v1707_v5 = vpop.permute.xlu1 %1706 }
 0xa18   :  { %v1708_v9 = vadd.f32 %v1707_v5, %v2489_v17  ;;  %v1711_v53 = vadd.f32 %v1710_v44, %v2493_v24 }
 0xa1a   :  { %v1712_v10 = vmax.f32 %v1704_v4, %v1708_v9 }
 0xa1c   :  { %v1713_v8 = vmax.f32 %v1712_v10, %v1711_v53 }
 0xa1e   :  { %v1714_v14 = vsub.f32 %v1704_v4, %v1713_v8  ;;  %v1717_v2 = vsub.f32 %v1708_v9, %v1713_v8  ;;  %v1721_v6 = vsub.f32 %v1711_v53, %v1713_v8 }
 0xa20   :  { %v1715_v52 = vmul.f32 1.442695, %v1714_v14  ;;  %v1718_v56 = vmul.f32 1.442695, %v1717_v2  ;;  %v1722_v23 = vmul.f32 1.442695, %v1721_v6 }
 0xa21   :  { %v1753_v2 = vld [vmem:[#allocation2 + $0x78] sm:$0xff] }
 0xa22   :  { %2128 = vpow2.f32 %v1715_v52 }
 0xa23   :  { %2130 = vpow2.f32 %v1718_v56 }
 0xa24   :  { %2132 = vpow2.f32 %v1722_v23 }
 0xa2f   :  { %v2129_v16 = vpop.eup %2128 }
 0xa30   :  { %v2131_v18 = vpop.eup %2130 }
 0xa31   :  { %v1720_v21 = vadd.f32 %v2131_v18, %v2129_v16  ;;  %v2133_v26 = vpop.eup %2132 }
 0xa33   :  { %v1724_v49 = vadd.f32 %v2133_v26, %v1720_v21 }
 0xa35   :  { %2134 = vlog2.f32 %v1724_v49 }
 0xa42   :  { %v2135_v31 = vpop.eup %2134 }
 0xa43   :  { %v1726_v32 = vmul.f32 0.6931472, %v2135_v31 }
 0xa45   :  { %v1727_v33 = vadd.f32 %v1726_v32, %v1713_v8 }
 0xa47   :  { %v1728_v35 = vadd.f32 %v1727_v33, %v1705_v63 }
 0xa49   :  { %1733 = vrot.lane.b32.xlu0 %v1728_v35, %s2181_s29  ;;  %1730 = vrot.lane.b32.xlu1 %v1728_v35, %s2183_s0 }
 0xabb   :  { %v1734_v39 = vpop.permute.xlu0 %1733  ;;  %v1731_v34 = vpop.permute.xlu1 %1730 }
 0xabc   :  { %v1732_v25 = vadd.f32 %v1731_v34, %v2489_v17  ;;  %v1735_v58 = vadd.f32 %v1734_v39, %v2493_v24 }
 0xabe   :  { %v1736_v40 = vmax.f32 %v1728_v35, %v1732_v25 }
 0xac0   :  { %v1737_v42 = vmax.f32 %v1736_v40, %v1735_v58 }
 0xac2   :  { %v1738_v48 = vsub.f32 %v1728_v35, %v1737_v42  ;;  %v1741_v59 = vsub.f32 %v1732_v25, %v1737_v42  ;;  %v1745_v43 = vsub.f32 %v1735_v58, %v1737_v42 }
 0xac4   :  { %v1739_v46 = vmul.f32 1.442695, %v1738_v48  ;;  %v1742_v55 = vmul.f32 1.442695, %v1741_v59  ;;  %v1746_v47 = vmul.f32 1.442695, %v1745_v43 }
 0xac6   :  { %2136 = vpow2.f32 %v1739_v46 }
 0xac7   :  { %2138 = vpow2.f32 %v1742_v55 }
 0xac8   :  { %2140 = vpow2.f32 %v1746_v47 }
 0xad3   :  { %v2137_v50 = vpop.eup %2136 }
 0xad4   :  { %v2139_v61 = vpop.eup %2138 }
 0xad5   :  { %v1744_v51 = vadd.f32 %v2139_v61, %v2137_v50  ;;  %v2141_v45 = vpop.eup %2140 }
 0xad7   :  { %v1748_v54 = vadd.f32 %v2141_v45, %v1744_v51 }
 0xad9   :  { %2142 = vlog2.f32 %v1748_v54 }
 0xae6   :  { %v2143_v36 = vpop.eup %2142 }
 0xae7   :  { %v1750_v1 = vmul.f32 0.6931472, %v2143_v36 }
 0xae9   :  { %v1751_v28 = vadd.f32 %v1750_v1, %v1737_v42 }
 0xaeb   :  { %v1752_v62 = vadd.f32 %v1751_v28, %v1729_v60 }
 0xaed   :  { %1757 = vrot.lane.b32.xlu0 %v1752_v62, %s2181_s29  ;;  %1754 = vrot.lane.b32.xlu1 %v1752_v62, %s2183_s0 }
 0xaf1   :  { %1785 = vperm.xlu0 %1935, %v1851_v30   ;;  %1780 = vperm.xlu1 %1934, %v1778_v57  }
 0xb5f   :  { %v1758_v11 = vpop.permute.xlu0 %1757  ;;  %v1755_v38 = vpop.permute.xlu1 %1754 }
 0xb60   :  { %v1756_v15 = vadd.f32 %v1755_v38, %v2489_v17  ;;  %v1759_v19 = vadd.f32 %v1758_v11, %v2493_v24 }
 0xb62   :  { %v1760_v0 = vmax.f32 %v1752_v62, %v1756_v15 }
 0xb64   :  { %v1761_v27 = vmax.f32 %v1760_v0, %v1759_v19 }
 0xb66   :  { %v1762_v20 = vsub.f32 %v1752_v62, %v1761_v27  ;;  %v1765_v22 = vsub.f32 %v1756_v15, %v1761_v27  ;;  %v1769_v3 = vsub.f32 %v1759_v19, %v1761_v27 }
 0xb68   :  { %v1763_v13 = vmul.f32 1.442695, %v1762_v20  ;;  %v1766_v41 = vmul.f32 1.442695, %v1765_v22  ;;  %v1770_v29 = vmul.f32 1.442695, %v1769_v3 }
 0xb6a   :  { %2144 = vpow2.f32 %v1763_v13 }
 0xb6b   :  { %2146 = vpow2.f32 %v1766_v41 }
 0xb6c   :  { %2148 = vpow2.f32 %v1770_v29  ;;  %v1786_v17 = vpop.permute.xlu0 %1785  ;;  %v1781_v10 = vpop.permute.xlu1 %1780 }
 0xb6d   :  { %vm1787_vm0 = vcmp.eq.s32.totalorder %v2237_v12, %v1786_v17  ;;  %vm1782_vm5 = vcmp.eq.s32.totalorder %v2237_v12, %v1781_v10 }
 0xb6e   :  { %vm1788_vm15 = vmor %vm1782_vm5, %vm1787_vm0 }
 0xb77   :  { %v2145_v4 = vpop.eup %2144 }
 0xb78   :  { %v2147_v44 = vpop.eup %2146 }
 0xb79   :  { %v1768_v5 = vadd.f32 %v2147_v44, %v2145_v4  ;;  %v2149_v9 = vpop.eup %2148 }
 0xb7b   :  { %v1772_v53 = vadd.f32 %v2149_v9, %v1768_v5 }
 0xb7d   :  { %2150 = vlog2.f32 %v1772_v53 }
 0xb8a   :  { %v2151_v24 = vpop.eup %2150 }
 0xb8b   :  { %v1774_v8 = vmul.f32 0.6931472, %v2151_v24 }
 0xb8d   :  { %v1775_v14 = vadd.f32 %v1774_v8, %v1761_v27 }
 0xb8f   :  { %v1776_v6 = vadd.f32 %v1775_v14, %v1753_v2 }
 0xb91   :  { %v1789_v52 = vsel %vm1788_vm15, %v1776_v6, -1e+30 }
 0xb92   :  { %1790 = vmax.xlane.f32.xlu1 %v1789_v52 }
 0xc1b   :  { %v1791_v56 = vpop.xlane.xlu1 %1790 }
 0xc1c   :  { %v1792_v23 = vsub.f32 %v1789_v52, %v1791_v56 }
 0xc1e   :  { %v1793_v16 = vmul.f32 1.442695, %v1792_v23 }
 0xc20   :  { %2152 = vpow2.f32 %v1793_v16 }
 0xc2d   :  { %v2153_v18 = vpop.eup %2152 }
 0xc2e   :  { %1795 = vadd.xlane.f32.xlu0 %v2153_v18 }
 0xcb7   :  { %v1796_v21 = vpop.xlane.xlu0 %1795 }
 0xcb8   :  { %2154 = vlog2.f32 %v1796_v21 }
 0xcc5   :  { %v2155_v26 = vpop.eup %2154 }
 0xcc6   :  { %v1798_v49 = vmul.f32 0.6931472, %v2155_v26 }
 0xcc8   :  { %v1799_v12 = vadd.f32 %v1798_v49, %v1791_v56 }
 0xcca   :  { %v1800_v31 = vsub.f32 0.0, %v1799_v12 }
 0xccc   :  { %1801 = vst [vmem:[#allocation3] sm:$0xff] %v1800_v31 }
 0xccd   :  { %2167 = shalt.err (!%p2164_p4)
}
 0xcce   :  { %1811 = dma.vmem_to_hbm [thread:$0]  %s1809_s21, 128, %s2714_s3, [#allocation4]  }
 0xccf   :  { %2176 = dma.done.wait [#allocation4], 128  }
 0xcd0   :  { %2177 = vsyncadd [#allocation4], 4294967168 }
 0xcd1   :  { %1815 = vsyncpa [#allocation4], 1 }

</bundles_post_ra>
